<compile_context>
chip_gen: v5e
topology: v5e:2x2
jax: 0.10.0
libtpu: 0.0.40
codegen_flags: <defaults>
</compile_context>

<pallas_src>
import functools

import jax
import jax.numpy as jnp
from jax.experimental import pallas as pl
from jax.experimental.pallas import tpu as pltpu

_BN_EPS = 1e-5


def _round_up(x, m):
    return (x + m - 1) // m * m


# ---------------------------------------------------------------------------
# Fused kernel: [dwconv3x3 + pwconv1x1 + BN + ReLU + CoordinateAttention] x 2
# One grid step processes NB images; activations are lane-dense (NB*H, W*C).
# All weights come from one bf16 slab (static row-slices), biases from one
# small f32 slab.
# ---------------------------------------------------------------------------
def _double_conv_kernel(x_ref, w_ref, b_ref, o_ref, *, nb, h, offs, bidx):
    m = nb * h                       # matmul M dimension (rows)
    slab = w_ref.shape[1]            # lane width of the weight slab (>=128)
    lin = x_ref.shape[2]             # input lane width (W * C_in)

    def wmat(name):                  # static, 8-aligned slice into the slab
        off, rows = offs[name]
        return w_ref[off:off + rows, :]

    def bvec(name):                  # (1, slab) f32 bias row
        k = bidx[name]
        return b_ref[k:k + 1, :]

    # Per-image edge masks for the vertical 3x3 halo (computed once, reused).
    rid = jax.lax.broadcasted_iota(jnp.int32, (m, 1), 0) % h
    first_row = rid == 0
    last_row = rid == (h - 1)

    def block(xin, tag):
        # --- depthwise 3x3 + pointwise 1x1 + BN + ReLU (one MXU matmul) ---
        # H halo: two sublane rolls (XLU) + edge masks.  W halo, pointwise
        # conv and BN scale are folded into the banded A matrix, and the
        # three vertical taps are merged into a single (3*Lin, slab) matmul.
        xs0 = jnp.where(first_row, 0.0, pltpu.roll(xin, 1, 0))     # x[h-1]
        xs2 = jnp.where(last_row, 0.0, pltpu.roll(xin, m - 1, 0))  # x[h+1]
        xcat = jnp.concatenate([xs0, xin, xs2], axis=1).astype(jnp.bfloat16)
        y = jnp.dot(xcat, wmat("A" + tag), preferred_element_type=jnp.float32)
        y = jnp.maximum(y + bvec("bdsc" + tag), 0.0)               # (m, slab)

        yb = y.astype(jnp.bfloat16)
        # --- CoordinateAttention, H branch (mean over W folded into GH) ---
        yh = jnp.maximum(
            jnp.dot(yb, wmat("GH" + tag), preferred_element_type=jnp.float32)
            + bvec("b1h" + tag), 0.0)
        a_h = jax.nn.sigmoid(
            jnp.dot(yh.astype(jnp.bfloat16), wmat("FH" + tag),
                    preferred_element_type=jnp.float32) + bvec("bhf" + tag))
        # --- W branch: per-image mean over H, natural (nb, slab) shape ----
        pw = jnp.mean(y.reshape(nb, h, slab), axis=1)              # (nb, slab)
        yw = jnp.maximum(
            jnp.dot(pw.astype(jnp.bfloat16), wmat("GW" + tag),
                    preferred_element_type=jnp.float32) + bvec("b1w" + tag), 0.0)
        a_w = jax.nn.sigmoid(
            jnp.dot(yw.astype(jnp.bfloat16), wmat("FW" + tag),
                    preferred_element_type=jnp.float32) + bvec("bwf" + tag))
        out = (y * a_h).reshape(nb, h, slab) * a_w[:, None, :]
        return out.reshape(m, slab)

    x = x_ref[...].reshape(m, lin).astype(jnp.float32)
    h1 = block(x, "1")
    h2 = block(h1, "2")
    o_ref[...] = h2.reshape(nb, h, slab).astype(o_ref.dtype)


def _cost(n, h, lin, slab, rows_a1, rows_a2, weight_bytes):
    flops = 0
    for rows_a in (rows_a1, rows_a2):
        flops += 2 * n * h * rows_a * slab        # fused dw+pw matmul
        flops += 2 * n * h * slab * slab * 2      # GH, FH
        flops += 2 * n * slab * slab * 2          # GW, FW
    trans = 4 * n * (h + 1) * slab                # sigmoids
    bytes_accessed = 4 * n * h * (lin + slab) + weight_bytes
    return pl.CostEstimate(flops=flops, transcendentals=trans,
                           bytes_accessed=bytes_accessed)


def _pallas_double_conv(xf, wslab, bslab, offs, bidx, images_per_step):
    """xf: (N, H, W*C_in) lane-dense activation. Returns (N, H, slab)."""
    n, h, lin = xf.shape
    slab = wslab.shape[1]
    # Images per grid step: fill M = NB*H toward 128 (single-TC optimum on
    # v5e/v6e).  On v7x prefer images_per_step = n // 2 so both TensorCores
    # get a "parallel" grid step.
    nb = images_per_step if images_per_step else min(n, max(1, 128 // h))
    nb = max(1, min(nb, n))
    while n % nb:
        nb -= 1
    kern = functools.partial(_double_conv_kernel, nb=nb, h=h,
                             offs=offs, bidx=bidx)
    weight_bytes = (wslab.size * wslab.dtype.itemsize
                    + bslab.size * bslab.dtype.itemsize)
    return pl.pallas_call(
        kern,
        out_shape=jax.ShapeDtypeStruct((n, h, slab), xf.dtype),
        grid=(n // nb,),
        in_specs=[
            pl.BlockSpec((nb, h, lin), lambda i: (i, 0, 0)),
            pl.BlockSpec(wslab.shape, lambda i: (0, 0)),   # resident weights
            pl.BlockSpec(bslab.shape, lambda i: (0, 0)),   # resident biases
        ],
        out_specs=pl.BlockSpec((nb, h, slab), lambda i: (i, 0, 0)),
        compiler_params=pltpu.CompilerParams(
            dimension_semantics=("parallel",),
            vmem_limit_bytes=32 * 1024 * 1024),
        cost_estimate=_cost(n, h, lin, slab, offs["A1"][1], offs["A2"][1],
                            weight_bytes),
    )(xf, wslab, bslab)


# ---------------------------------------------------------------------------
# Parameter construction (PyTorch-layout synthetic weights) + host-side fold.
# ---------------------------------------------------------------------------
def make_double_conv_params(key, c_in, c_out, c_mid=None, reduction=32):
    if not c_mid:
        c_mid = c_out

    def dsconv_bn(k, ci, co):
        k1, k2, k3, k4 = jax.random.split(k, 4)
        return dict(
            dw=0.3 * jax.random.normal(k1, (ci, 3, 3), jnp.float32),  # bias=False
            pw=0.3 * jax.random.normal(k2, (co, ci), jnp.float32),    # bias=False
            bn=dict(gamma=1.0 + 0.1 * jax.random.normal(k3, (co,), jnp.float32),
                    beta=0.1 * jax.random.normal(k4, (co,), jnp.float32),
                    mean=jnp.zeros((co,), jnp.float32),
                    var=jnp.ones((co,), jnp.float32)),
        )

    def coord_attn(k, c):
        mip = max(8, c // reduction)
        ks = jax.random.split(k, 8)
        return dict(
            w1=0.3 * jax.random.normal(ks[0], (mip, c), jnp.float32),
            b1=0.1 * jax.random.normal(ks[1], (mip,), jnp.float32),
            bn1=dict(gamma=1.0 + 0.1 * jax.random.normal(ks[2], (mip,), jnp.float32),
                     beta=0.1 * jax.random.normal(ks[3], (mip,), jnp.float32),
                     mean=jnp.zeros((mip,), jnp.float32),
                     var=jnp.ones((mip,), jnp.float32)),
            wh=0.3 * jax.random.normal(ks[4], (c, mip), jnp.float32),
            bh=0.1 * jax.random.normal(ks[5], (c,), jnp.float32),
            ww=0.3 * jax.random.normal(ks[6], (c, mip), jnp.float32),
            bw=0.1 * jax.random.normal(ks[7], (c,), jnp.float32),
        )

    k1, k2, k3, k4 = jax.random.split(key, 4)
    b1 = dsconv_bn(k1, c_in, c_mid)
    b1["ca"] = coord_attn(k2, c_mid)
    b2 = dsconv_bn(k3, c_mid, c_out)
    b2["ca"] = coord_attn(k4, c_out)
    return dict(block1=b1, block2=b2)


def _bn_affine(bn):
    s = bn["gamma"] / jnp.sqrt(bn["var"] + _BN_EPS)
    t = bn["beta"] - bn["mean"] * s
    return s, t


def _fold_block(blk, W, in_lanes, slab_lanes):
    """Fold one (DSConv + BN + ReLU + CoordinateAttention) stage into
    lane-dense, zero-padded, kernel-ready matrices (runs once, host side)."""
    K = blk["dw"]                     # (Cin, 3, 3)
    P = blk["pw"]                     # (Cout, Cin)
    cin, cout = K.shape[0], P.shape[0]
    wcin, wcout = W * cin, W * cout
    assert in_lanes >= wcin and wcout <= slab_lanes
    s_bn, t_bn = _bn_affine(blk["bn"])
    pt = (P * s_bn[:, None]).T        # (Cin, Cout): P[o,c] * bn_scale[o]

    # Banded depthwise+pointwise matrices, one per vertical tap i, stacked:
    #   A[tap*in_lanes + w'*Cin + c, w*Cout + o] = K[c,i,j]*pt[c,o], j=w'-w+1
    taps = []
    for i in range(3):
        a = jnp.zeros((wcin, wcout), jnp.float32)
        for j in range(3):
            band = jnp.eye(W, k=1 - j, dtype=jnp.float32)
            a = a + jnp.kron(band, K[:, i, j][:, None] * pt)
        taps.append(jnp.pad(a, ((0, in_lanes - wcin), (0, slab_lanes - wcout))))
    A = jnp.concatenate(taps, axis=0)                     # (3*in_lanes, slab)
    bdsc = jnp.pad(jnp.tile(t_bn, W), (0, slab_lanes - wcout))

    # CoordinateAttention folds (channel count C = Cout of this stage).
    ca = blk["ca"]
    s1, t1 = _bn_affine(ca["bn1"])
    mip = ca["w1"].shape[0]
    wmip = W * mip
    assert mip <= slab_lanes and wmip <= slab_lanes
    w1s = ca["w1"] * s1[:, None]                          # conv1 * bn1 scale
    b1c = ca["b1"] * s1 + t1
    eye_w = jnp.eye(W, dtype=jnp.float32)
    GH = jnp.pad(jnp.kron(jnp.ones((W, 1), jnp.float32), w1s.T) / W,
                 ((0, slab_lanes - wcout), (0, slab_lanes - mip)))
    GW = jnp.pad(jnp.kron(eye_w, w1s.T),
                 ((0, slab_lanes - wcout), (0, slab_lanes - wmip)))
    FH = jnp.pad(jnp.kron(jnp.ones((1, W), jnp.float32), ca["wh"].T),
                 ((0, slab_lanes - mip), (0, slab_lanes - wcout)))
    FW = jnp.pad(jnp.kron(eye_w, ca["ww"].T),
                 ((0, slab_lanes - wmip), (0, slab_lanes - wcout)))
    mats = dict(A=A, GH=GH, GW=GW, FH=FH, FW=FW)
    biases = dict(
        bdsc=bdsc,
        b1h=jnp.pad(b1c, (0, slab_lanes - mip)),
        b1w=jnp.pad(jnp.tile(b1c, W), (0, slab_lanes - wmip)),
        bhf=jnp.pad(jnp.tile(ca["bh"], W), (0, slab_lanes - wcout)),
        bwf=jnp.pad(jnp.tile(ca["bw"], W), (0, slab_lanes - wcout)),
    )
    return mats, biases


def fold_double_conv_params(params, W):
    b1, b2 = params["block1"], params["block2"]
    cin = b1["dw"].shape[0]
    cmid = b1["pw"].shape[0]
    cout = b2["pw"].shape[0]
    mip1 = b1["ca"]["w1"].shape[0]
    mip2 = b2["ca"]["w1"].shape[0]
    slab = _round_up(max(W * cmid, W * cout, W * mip1, W * mip2, 128), 128)
    m1, bias1 = _fold_block(b1, W, in_lanes=W * cin, slab_lanes=slab)
    m2, bias2 = _fold_block(b2, W, in_lanes=slab, slab_lanes=slab)

    # Pack the 10 matmul matrices into one bf16 slab (8-row-aligned segments).
    segments = [("A1", m1["A"]), ("GH1", m1["GH"]), ("GW1", m1["GW"]),
                ("FH1", m1["FH"]), ("FW1", m1["FW"]),
                ("A2", m2["A"]), ("GH2", m2["GH"]), ("GW2", m2["GW"]),
                ("FH2", m2["FH"]), ("FW2", m2["FW"])]
    offsets, parts, off = {}, [], 0
    for name, mat in segments:
        rows = mat.shape[0]
        offsets[name] = (off, rows)
        rows_p = _round_up(rows, 8)
        parts.append(jnp.pad(mat, ((0, rows_p - rows), (0, 0))))
        off += rows_p
    wslab = jnp.concatenate(parts, axis=0).astype(jnp.bfloat16)

    # Pack the 10 bias vectors into one small f32 slab.
    bnames = ["bdsc1", "b1h1", "b1w1", "bhf1", "bwf1",
              "bdsc2", "b1h2", "b1w2", "bhf2", "bwf2"]
    bvals = [bias1["bdsc"], bias1["b1h"], bias1["b1w"], bias1["bhf"], bias1["bwf"],
             bias2["bdsc"], bias2["b1h"], bias2["b1w"], bias2["bhf"], bias2["bwf"]]
    brows = jnp.stack(bvals, axis=0)
    bslab = jnp.pad(brows, ((0, _round_up(len(bnames), 8) - len(bnames)), (0, 0)))
    bias_idx = {n: i for i, n in enumerate(bnames)}

    return dict(wslab=wslab, bslab=bslab, offsets=offsets, bias_idx=bias_idx,
                w=W, c_out=cout, slab=slab)


def make_double_conv_forward(params, W, images_per_step=None):
    """Fold params once; return jitted NCHW and NHWC forward functions."""
    folded = fold_double_conv_params(params, W)
    wslab, bslab = folded["wslab"], folded["bslab"]
    offs, bidx = folded["offsets"], folded["bias_idx"]
    c_out, w_fold = folded["c_out"], folded["w"]

    @jax.jit
    def forward_nchw(x_nchw):
        n, c, h, w = x_nchw.shape
        assert w == w_fold
        xf = jnp.transpose(x_nchw, (0, 2, 3, 1)).reshape(n, h, w * c)
        yf = _pallas_double_conv(xf, wslab, bslab, offs, bidx, images_per_step)
        yf = yf[:, :, :w * c_out]
        return jnp.transpose(yf.reshape(n, h, w, c_out), (0, 3, 1, 2))

    @jax.jit
    def forward_nhwc(x_nhwc):
        n, h, w, c = x_nhwc.shape
        assert w == w_fold
        yf = _pallas_double_conv(x_nhwc.reshape(n, h, w * c), wslab, bslab,
                                 offs, bidx, images_per_step)
        return yf[:, :, :w * c_out].reshape(n, h, w, c_out)

    return forward_nchw, forward_nhwc


# ---------------------------------------------------------------------------
# Pure-JAX reference (eval-mode BN), used only to validate the kernel.
# ---------------------------------------------------------------------------
def _reference_double_conv(x_nchw, params):
    def stage(x, blk):
        K, P = blk["dw"], blk["pw"]
        n, c, hh, ww = x.shape
        xp = jnp.pad(x, ((0, 0), (0, 0), (1, 1), (1, 1)))
        dw = jnp.zeros_like(x)
        for i in range(3):
            for j in range(3):
                dw = dw + K[None, :, i, j, None, None] * xp[:, :, i:i + hh, j:j + ww]
        pw = jnp.einsum("nchw,oc->nohw", dw, P)
        s, t = _bn_affine(blk["bn"])
        y = jnp.maximum(pw * s[None, :, None, None] + t[None, :, None, None], 0.0)
        ca = blk["ca"]
        s1, t1 = _bn_affine(ca["bn1"])

        def conv1(v):  # (n, c, L) -> (n, mip, L), conv1 + bn1 + relu
            u = jnp.einsum("ncl,mc->nml", v, ca["w1"]) + ca["b1"][None, :, None]
            return jnp.maximum(u * s1[None, :, None] + t1[None, :, None], 0.0)

        yh = conv1(y.mean(axis=3))            # pool over W -> (n, mip, H)
        yw = conv1(y.mean(axis=2))            # pool over H -> (n, mip, W)
        a_h = jax.nn.sigmoid(jnp.einsum("nml,om->nol", yh, ca["wh"])
                             + ca["bh"][None, :, None])
        a_w = jax.nn.sigmoid(jnp.einsum("nml,om->nol", yw, ca["ww"])
                             + ca["bw"][None, :, None])
        return y * a_h[:, :, :, None] * a_w[:, :, None, :]

    return stage(stage(x_nchw, params["block1"]), params["block2"])


if __name__ == "__main__":
    key = jax.random.PRNGKey(0)
    k_x, k_p = jax.random.split(key)

    N, C_IN, C_OUT, H, W = 2, 4, 8, 16, 16
    x = jax.random.normal(k_x, (N, C_IN, H, W), jnp.float32)
    params = make_double_conv_params(k_p, C_IN, C_OUT)

    forward_nchw, _forward_nhwc = make_double_conv_forward(params, W)
    out = forward_nchw(x)
    jax.block_until_ready(out)

    assert out.shape == (N, C_OUT, H, W), out.shape
    assert bool(jnp.all(jnp.isfinite(out))), "non-finite output"

    ref = jax.jit(_reference_double_conv)(x, params)
    err = float(jnp.max(jnp.abs(out - ref)))
    # Loose tolerance: matmul operands are bf16 (f32 accumulation).
    assert err < 0.15, f"max abs error vs reference too large: {err}"

    print("KERNEL_OK")
</pallas_src>

<mosaic_0001>
module attributes {stable_mosaic.version = 11 : i64} {
  func.func @_double_conv_kernel(%arg0: i32, %arg1: memref<2x16x64xf32, #tpu.memory_space<vmem>>, %arg2: memref<1600x128xbf16, #tpu.memory_space<vmem>>, %arg3: memref<16x128xf32, #tpu.memory_space<vmem>>, %arg4: memref<2x16x128xf32, #tpu.memory_space<vmem>>) attributes {dimension_semantics = [#tpu.dimension_semantics<parallel>], iteration_bounds = array<i64: 1>, scalar_prefetch = 0 : i64, scratch_operands = 0 : i64, tpu.core_type = #tpu.core_type<tc>, window_params = [{transform_indices = @transform_0, window_bounds = array<i64: 2, 16, 64>}, {pipeline_mode = #tpu.pipeline_mode<synchronous>, transform_indices = @transform_1, window_bounds = array<i64: 1600, 128>}, {pipeline_mode = #tpu.pipeline_mode<synchronous>, transform_indices = @transform_2, window_bounds = array<i64: 16, 128>}, {transform_indices = @transform_3, window_bounds = array<i64: 2, 16, 128>}]} {
    %0 = tpu.iota {dimensions = array<i32: 0>} : vector<32x1xi32>
    %c16_i32 = arith.constant 16 : i32
    %c0_i32 = arith.constant 0 : i32
    %1 = arith.cmpi eq, %c16_i32, %c0_i32 : i32
    %c1_i32 = arith.constant 1 : i32
    %2 = arith.select %1, %c1_i32, %c16_i32 : i32
    %3 = vector.broadcast %2 : i32 to vector<32x1xi32>
    %4 = arith.remsi %0, %3 : vector<32x1xi32>
    %c0_i32_0 = arith.constant 0 : i32
    %5 = vector.broadcast %c0_i32_0 : i32 to vector<32x1xi32>
    %6 = arith.cmpi ne, %4, %5 : vector<32x1xi32>
    %c0_i32_1 = arith.constant 0 : i32
    %7 = vector.broadcast %c0_i32_1 : i32 to vector<32x1xi32>
    %8 = arith.cmpi slt, %4, %7 : vector<32x1xi32>
    %c0_i32_2 = arith.constant 0 : i32
    %9 = arith.cmpi slt, %2, %c0_i32_2 : i32
    %10 = vector.broadcast %9 : i1 to vector<32x1xi1>
    %11 = vector.broadcast %10 : vector<32x1xi1> to vector<32x1xi1>
    %12 = arith.xori %8, %11 : vector<32x1xi1>
    %13 = arith.andi %12, %6 : vector<32x1xi1>
    %14 = vector.broadcast %2 : i32 to vector<32x1xi32>
    %15 = arith.addi %4, %14 : vector<32x1xi32>
    %16 = arith.select %13, %15, %4 : vector<32x1xi1>, vector<32x1xi32>
    %c0_i32_3 = arith.constant 0 : i32
    %17 = vector.broadcast %c0_i32_3 : i32 to vector<32x1xi32>
    %18 = arith.cmpi eq, %16, %17 : vector<32x1xi32>
    %c15_i32 = arith.constant 15 : i32
    %19 = vector.broadcast %c15_i32 : i32 to vector<32x1xi32>
    %20 = arith.cmpi eq, %16, %19 : vector<32x1xi32>
    %c0 = arith.constant 0 : index
    %c0_4 = arith.constant 0 : index
    %c0_5 = arith.constant 0 : index
    %21 = vector.load %arg1[%c0, %c0_4, %c0_5] : memref<2x16x64xf32, #tpu.memory_space<vmem>>, vector<2x16x64xf32>
    %22 = vector.shape_cast %21 : vector<2x16x64xf32> to vector<32x64xf32>
    %c1_i32_6 = arith.constant 1 : i32
    %23 = tpu.dynamic_rotate %22 by %c1_i32_6 dim 0 : vector<32x64xf32>, i32 -> vector<32x64xf32>
    %cst = arith.constant 0.000000e+00 : f32
    %24 = vector.shape_cast %18 : vector<32x1xi1> to vector<32x1xi1>
    %25 = vector.broadcast %24 : vector<32x1xi1> to vector<32x64xi1>
    %26 = vector.broadcast %cst : f32 to vector<32x64xf32>
    %27 = arith.select %25, %26, %23 : vector<32x64xi1>, vector<32x64xf32>
    %c31_i32 = arith.constant 31 : i32
    %28 = tpu.dynamic_rotate %22 by %c31_i32 dim 0 : vector<32x64xf32>, i32 -> vector<32x64xf32>
    %cst_7 = arith.constant 0.000000e+00 : f32
    %29 = vector.shape_cast %20 : vector<32x1xi1> to vector<32x1xi1>
    %30 = vector.broadcast %29 : vector<32x1xi1> to vector<32x64xi1>
    %31 = vector.broadcast %cst_7 : f32 to vector<32x64xf32>
    %32 = arith.select %30, %31, %28 : vector<32x64xi1>, vector<32x64xf32>
    %33 = tpu.concatenate %27, %22, %32 in 1 : vector<32x64xf32>, vector<32x64xf32>, vector<32x64xf32> -> vector<32x192xf32>
    %34 = arith.truncf %33 : vector<32x192xf32> to vector<32x192xbf16>
    %c0_8 = arith.constant 0 : index
    %c0_9 = arith.constant 0 : index
    %35 = vector.load %arg2[%c0_8, %c0_9] : memref<1600x128xbf16, #tpu.memory_space<vmem>>, vector<192x128xbf16>
    %cst_10 = arith.constant dense<0.000000e+00> : vector<32x128xf32>
    %36 = tpu.matmul %34, %35, %cst_10 {dimension_numbers = #tpu.dot_dimension_numbers<[1], [0], [0], [1], [0, 0, 1, 1], [], []>} : vector<32x192xbf16>, vector<192x128xbf16>, vector<32x128xf32> -> vector<32x128xf32>
    %c0_11 = arith.constant 0 : index
    %c0_12 = arith.constant 0 : index
    %37 = vector.load %arg3[%c0_11, %c0_12] : memref<16x128xf32, #tpu.memory_space<vmem>>, vector<1x128xf32>
    %38 = vector.broadcast %37 : vector<1x128xf32> to vector<32x128xf32>
    %39 = arith.addf %36, %38 : vector<32x128xf32>
    %cst_13 = arith.constant 0.000000e+00 : f32
    %40 = vector.broadcast %cst_13 : f32 to vector<32x128xf32>
    %41 = arith.maximumf %39, %40 : vector<32x128xf32>
    %42 = arith.truncf %41 : vector<32x128xf32> to vector<32x128xbf16>
    %c192 = arith.constant 192 : index
    %c0_14 = arith.constant 0 : index
    %43 = vector.load %arg2[%c192, %c0_14] : memref<1600x128xbf16, #tpu.memory_space<vmem>>, vector<128x128xbf16>
    %cst_15 = arith.constant dense<0.000000e+00> : vector<32x128xf32>
    %44 = tpu.matmul %42, %43, %cst_15 {dimension_numbers = #tpu.dot_dimension_numbers<[1], [0], [0], [1], [0, 0, 1, 1], [], []>} : vector<32x128xbf16>, vector<128x128xbf16>, vector<32x128xf32> -> vector<32x128xf32>
    %c1 = arith.constant 1 : index
    %c0_16 = arith.constant 0 : index
    %45 = vector.load %arg3[%c1, %c0_16] : memref<16x128xf32, #tpu.memory_space<vmem>>, vector<1x128xf32>
    %46 = vector.broadcast %45 : vector<1x128xf32> to vector<32x128xf32>
    %47 = arith.addf %44, %46 : vector<32x128xf32>
    %cst_17 = arith.constant 0.000000e+00 : f32
    %48 = vector.broadcast %cst_17 : f32 to vector<32x128xf32>
    %49 = arith.maximumf %47, %48 : vector<32x128xf32>
    %50 = arith.truncf %49 : vector<32x128xf32> to vector<32x128xbf16>
    %c448 = arith.constant 448 : index
    %c0_18 = arith.constant 0 : index
    %51 = vector.load %arg2[%c448, %c0_18] : memref<1600x128xbf16, #tpu.memory_space<vmem>>, vector<128x128xbf16>
    %cst_19 = arith.constant dense<0.000000e+00> : vector<32x128xf32>
    %52 = tpu.matmul %50, %51, %cst_19 {dimension_numbers = #tpu.dot_dimension_numbers<[1], [0], [0], [1], [0, 0, 1, 1], [], []>} : vector<32x128xbf16>, vector<128x128xbf16>, vector<32x128xf32> -> vector<32x128xf32>
    %c3 = arith.constant 3 : index
    %c0_20 = arith.constant 0 : index
    %53 = vector.load %arg3[%c3, %c0_20] : memref<16x128xf32, #tpu.memory_space<vmem>>, vector<1x128xf32>
    %54 = vector.broadcast %53 : vector<1x128xf32> to vector<32x128xf32>
    %55 = arith.addf %52, %54 : vector<32x128xf32>
    %56 = arith.negf %55 : vector<32x128xf32>
    %57 = math.exp %56 : vector<32x128xf32>
    %cst_21 = arith.constant 1.000000e+00 : f32
    %58 = vector.broadcast %cst_21 : f32 to vector<32x128xf32>
    %59 = arith.addf %58, %57 : vector<32x128xf32>
    %60 = arith.divf %58, %59 : vector<32x128xf32>
    %61 = vector.shape_cast %41 : vector<32x128xf32> to vector<2x16x128xf32>
    %cst_22 = arith.constant dense<0.000000e+00> : vector<2x128xf32>
    %62 = vector.multi_reduction <add>, %61, %cst_22 [1] : vector<2x16x128xf32> to vector<2x128xf32>
    %cst_23 = arith.constant 1.600000e+01 : f32
    %63 = vector.broadcast %cst_23 : f32 to vector<2x128xf32>
    %64 = arith.divf %62, %63 : vector<2x128xf32>
    %65 = arith.truncf %64 : vector<2x128xf32> to vector<2x128xbf16>
    %c320 = arith.constant 320 : index
    %c0_24 = arith.constant 0 : index
    %66 = vector.load %arg2[%c320, %c0_24] : memref<1600x128xbf16, #tpu.memory_space<vmem>>, vector<128x128xbf16>
    %cst_25 = arith.constant dense<0.000000e+00> : vector<2x128xf32>
    %67 = tpu.matmul %65, %66, %cst_25 {dimension_numbers = #tpu.dot_dimension_numbers<[1], [0], [0], [1], [0, 0, 1, 1], [], []>} : vector<2x128xbf16>, vector<128x128xbf16>, vector<2x128xf32> -> vector<2x128xf32>
    %c2 = arith.constant 2 : index
    %c0_26 = arith.constant 0 : index
    %68 = vector.load %arg3[%c2, %c0_26] : memref<16x128xf32, #tpu.memory_space<vmem>>, vector<1x128xf32>
    %69 = vector.broadcast %68 : vector<1x128xf32> to vector<2x128xf32>
    %70 = arith.addf %67, %69 : vector<2x128xf32>
    %cst_27 = arith.constant 0.000000e+00 : f32
    %71 = vector.broadcast %cst_27 : f32 to vector<2x128xf32>
    %72 = arith.maximumf %70, %71 : vector<2x128xf32>
    %73 = arith.truncf %72 : vector<2x128xf32> to vector<2x128xbf16>
    %c576 = arith.constant 576 : index
    %c0_28 = arith.constant 0 : index
    %74 = vector.load %arg2[%c576, %c0_28] : memref<1600x128xbf16, #tpu.memory_space<vmem>>, vector<128x128xbf16>
    %cst_29 = arith.constant dense<0.000000e+00> : vector<2x128xf32>
    %75 = tpu.matmul %73, %74, %cst_29 {dimension_numbers = #tpu.dot_dimension_numbers<[1], [0], [0], [1], [0, 0, 1, 1], [], []>} : vector<2x128xbf16>, vector<128x128xbf16>, vector<2x128xf32> -> vector<2x128xf32>
    %c4 = arith.constant 4 : index
    %c0_30 = arith.constant 0 : index
    %76 = vector.load %arg3[%c4, %c0_30] : memref<16x128xf32, #tpu.memory_space<vmem>>, vector<1x128xf32>
    %77 = vector.broadcast %76 : vector<1x128xf32> to vector<2x128xf32>
    %78 = arith.addf %75, %77 : vector<2x128xf32>
    %79 = arith.negf %78 : vector<2x128xf32>
    %80 = math.exp %79 : vector<2x128xf32>
    %cst_31 = arith.constant 1.000000e+00 : f32
    %81 = vector.broadcast %cst_31 : f32 to vector<2x128xf32>
    %82 = arith.addf %81, %80 : vector<2x128xf32>
    %83 = arith.divf %81, %82 : vector<2x128xf32>
    %84 = arith.mulf %41, %60 : vector<32x128xf32>
    %85 = vector.shape_cast %84 : vector<32x128xf32> to vector<2x16x128xf32>
    %86 = vector.shape_cast %83 : vector<2x128xf32> to vector<2x1x128xf32>
    %87 = vector.broadcast %86 : vector<2x1x128xf32> to vector<2x16x128xf32>
    %88 = arith.mulf %85, %87 : vector<2x16x128xf32>
    %89 = vector.shape_cast %88 : vector<2x16x128xf32> to vector<32x128xf32>
    %c1_i32_32 = arith.constant 1 : i32
    %90 = tpu.dynamic_rotate %89 by %c1_i32_32 dim 0 : vector<32x128xf32>, i32 -> vector<32x128xf32>
    %cst_33 = arith.constant 0.000000e+00 : f32
    %91 = vector.shape_cast %18 : vector<32x1xi1> to vector<32x1xi1>
    %92 = vector.broadcast %91 : vector<32x1xi1> to vector<32x128xi1>
    %93 = vector.broadcast %cst_33 : f32 to vector<32x128xf32>
    %94 = arith.select %92, %93, %90 : vector<32x128xi1>, vector<32x128xf32>
    %c31_i32_34 = arith.constant 31 : i32
    %95 = tpu.dynamic_rotate %89 by %c31_i32_34 dim 0 : vector<32x128xf32>, i32 -> vector<32x128xf32>
    %cst_35 = arith.constant 0.000000e+00 : f32
    %96 = vector.shape_cast %20 : vector<32x1xi1> to vector<32x1xi1>
    %97 = vector.broadcast %96 : vector<32x1xi1> to vector<32x128xi1>
    %98 = vector.broadcast %cst_35 : f32 to vector<32x128xf32>
    %99 = arith.select %97, %98, %95 : vector<32x128xi1>, vector<32x128xf32>
    %100 = tpu.concatenate %94, %89, %99 in 1 : vector<32x128xf32>, vector<32x128xf32>, vector<32x128xf32> -> vector<32x384xf32>
    %101 = arith.truncf %100 : vector<32x384xf32> to vector<32x384xbf16>
    %c704 = arith.constant 704 : index
    %c0_36 = arith.constant 0 : index
    %102 = vector.load %arg2[%c704, %c0_36] : memref<1600x128xbf16, #tpu.memory_space<vmem>>, vector<384x128xbf16>
    %cst_37 = arith.constant dense<0.000000e+00> : vector<32x128xf32>
    %103 = tpu.matmul %101, %102, %cst_37 {dimension_numbers = #tpu.dot_dimension_numbers<[1], [0], [0], [1], [0, 0, 1, 1], [], []>} : vector<32x384xbf16>, vector<384x128xbf16>, vector<32x128xf32> -> vector<32x128xf32>
    %c5 = arith.constant 5 : index
    %c0_38 = arith.constant 0 : index
    %104 = vector.load %arg3[%c5, %c0_38] : memref<16x128xf32, #tpu.memory_space<vmem>>, vector<1x128xf32>
    %105 = vector.broadcast %104 : vector<1x128xf32> to vector<32x128xf32>
    %106 = arith.addf %103, %105 : vector<32x128xf32>
    %cst_39 = arith.constant 0.000000e+00 : f32
    %107 = vector.broadcast %cst_39 : f32 to vector<32x128xf32>
    %108 = arith.maximumf %106, %107 : vector<32x128xf32>
    %109 = arith.truncf %108 : vector<32x128xf32> to vector<32x128xbf16>
    %c1088 = arith.constant 1088 : index
    %c0_40 = arith.constant 0 : index
    %110 = vector.load %arg2[%c1088, %c0_40] : memref<1600x128xbf16, #tpu.memory_space<vmem>>, vector<128x128xbf16>
    %cst_41 = arith.constant dense<0.000000e+00> : vector<32x128xf32>
    %111 = tpu.matmul %109, %110, %cst_41 {dimension_numbers = #tpu.dot_dimension_numbers<[1], [0], [0], [1], [0, 0, 1, 1], [], []>} : vector<32x128xbf16>, vector<128x128xbf16>, vector<32x128xf32> -> vector<32x128xf32>
    %c6 = arith.constant 6 : index
    %c0_42 = arith.constant 0 : index
    %112 = vector.load %arg3[%c6, %c0_42] : memref<16x128xf32, #tpu.memory_space<vmem>>, vector<1x128xf32>
    %113 = vector.broadcast %112 : vector<1x128xf32> to vector<32x128xf32>
    %114 = arith.addf %111, %113 : vector<32x128xf32>
    %cst_43 = arith.constant 0.000000e+00 : f32
    %115 = vector.broadcast %cst_43 : f32 to vector<32x128xf32>
    %116 = arith.maximumf %114, %115 : vector<32x128xf32>
    %117 = arith.truncf %116 : vector<32x128xf32> to vector<32x128xbf16>
    %c1344 = arith.constant 1344 : index
    %c0_44 = arith.constant 0 : index
    %118 = vector.load %arg2[%c1344, %c0_44] : memref<1600x128xbf16, #tpu.memory_space<vmem>>, vector<128x128xbf16>
    %cst_45 = arith.constant dense<0.000000e+00> : vector<32x128xf32>
    %119 = tpu.matmul %117, %118, %cst_45 {dimension_numbers = #tpu.dot_dimension_numbers<[1], [0], [0], [1], [0, 0, 1, 1], [], []>} : vector<32x128xbf16>, vector<128x128xbf16>, vector<32x128xf32> -> vector<32x128xf32>
    %c8 = arith.constant 8 : index
    %c0_46 = arith.constant 0 : index
    %120 = vector.load %arg3[%c8, %c0_46] : memref<16x128xf32, #tpu.memory_space<vmem>>, vector<1x128xf32>
    %121 = vector.broadcast %120 : vector<1x128xf32> to vector<32x128xf32>
    %122 = arith.addf %119, %121 : vector<32x128xf32>
    %123 = arith.negf %122 : vector<32x128xf32>
    %124 = math.exp %123 : vector<32x128xf32>
    %cst_47 = arith.constant 1.000000e+00 : f32
    %125 = vector.broadcast %cst_47 : f32 to vector<32x128xf32>
    %126 = arith.addf %125, %124 : vector<32x128xf32>
    %127 = arith.divf %125, %126 : vector<32x128xf32>
    %128 = vector.shape_cast %108 : vector<32x128xf32> to vector<2x16x128xf32>
    %cst_48 = arith.constant dense<0.000000e+00> : vector<2x128xf32>
    %129 = vector.multi_reduction <add>, %128, %cst_48 [1] : vector<2x16x128xf32> to vector<2x128xf32>
    %cst_49 = arith.constant 1.600000e+01 : f32
    %130 = vector.broadcast %cst_49 : f32 to vector<2x128xf32>
    %131 = arith.divf %129, %130 : vector<2x128xf32>
    %132 = arith.truncf %131 : vector<2x128xf32> to vector<2x128xbf16>
    %c1216 = arith.constant 1216 : index
    %c0_50 = arith.constant 0 : index
    %133 = vector.load %arg2[%c1216, %c0_50] : memref<1600x128xbf16, #tpu.memory_space<vmem>>, vector<128x128xbf16>
    %cst_51 = arith.constant dense<0.000000e+00> : vector<2x128xf32>
    %134 = tpu.matmul %132, %133, %cst_51 {dimension_numbers = #tpu.dot_dimension_numbers<[1], [0], [0], [1], [0, 0, 1, 1], [], []>} : vector<2x128xbf16>, vector<128x128xbf16>, vector<2x128xf32> -> vector<2x128xf32>
    %c7 = arith.constant 7 : index
    %c0_52 = arith.constant 0 : index
    %135 = vector.load %arg3[%c7, %c0_52] : memref<16x128xf32, #tpu.memory_space<vmem>>, vector<1x128xf32>
    %136 = vector.broadcast %135 : vector<1x128xf32> to vector<2x128xf32>
    %137 = arith.addf %134, %136 : vector<2x128xf32>
    %cst_53 = arith.constant 0.000000e+00 : f32
    %138 = vector.broadcast %cst_53 : f32 to vector<2x128xf32>
    %139 = arith.maximumf %137, %138 : vector<2x128xf32>
    %140 = arith.truncf %139 : vector<2x128xf32> to vector<2x128xbf16>
    %c1472 = arith.constant 1472 : index
    %c0_54 = arith.constant 0 : index
    %141 = vector.load %arg2[%c1472, %c0_54] : memref<1600x128xbf16, #tpu.memory_space<vmem>>, vector<128x128xbf16>
    %cst_55 = arith.constant dense<0.000000e+00> : vector<2x128xf32>
    %142 = tpu.matmul %140, %141, %cst_55 {dimension_numbers = #tpu.dot_dimension_numbers<[1], [0], [0], [1], [0, 0, 1, 1], [], []>} : vector<2x128xbf16>, vector<128x128xbf16>, vector<2x128xf32> -> vector<2x128xf32>
    %c9 = arith.constant 9 : index
    %c0_56 = arith.constant 0 : index
    %143 = vector.load %arg3[%c9, %c0_56] : memref<16x128xf32, #tpu.memory_space<vmem>>, vector<1x128xf32>
    %144 = vector.broadcast %143 : vector<1x128xf32> to vector<2x128xf32>
    %145 = arith.addf %142, %144 : vector<2x128xf32>
    %146 = arith.negf %145 : vector<2x128xf32>
    %147 = math.exp %146 : vector<2x128xf32>
    %cst_57 = arith.constant 1.000000e+00 : f32
    %148 = vector.broadcast %cst_57 : f32 to vector<2x128xf32>
    %149 = arith.addf %148, %147 : vector<2x128xf32>
    %150 = arith.divf %148, %149 : vector<2x128xf32>
    %151 = arith.mulf %108, %127 : vector<32x128xf32>
    %152 = vector.shape_cast %151 : vector<32x128xf32> to vector<2x16x128xf32>
    %153 = vector.shape_cast %150 : vector<2x128xf32> to vector<2x1x128xf32>
    %154 = vector.broadcast %153 : vector<2x1x128xf32> to vector<2x16x128xf32>
    %155 = arith.mulf %152, %154 : vector<2x16x128xf32>
    %156 = vector.shape_cast %155 : vector<2x16x128xf32> to vector<32x128xf32>
    %157 = vector.shape_cast %156 : vector<32x128xf32> to vector<2x16x128xf32>
    %c0_58 = arith.constant 0 : index
    %c0_59 = arith.constant 0 : index
    %c0_60 = arith.constant 0 : index
    %158 = vector.load %arg4[%c0_58, %c0_59, %c0_60] : memref<2x16x128xf32, #tpu.memory_space<vmem>>, vector<2x16x128xf32>
    tpu.vector_store %arg4[%c0_58, %c0_59, %c0_60], %157 {strides = array<i32>} : memref<2x16x128xf32, #tpu.memory_space<vmem>>, vector<2x16x128xf32>,
    return
  }
  func.func @transform_0(%arg0: i32) -> (i32, i32, i32) {
    %c0_i32 = arith.constant 0 : i32
    %c0_i32_0 = arith.constant 0 : i32
    %c0_i32_1 = arith.constant 0 : i32
    return %arg0, %c0_i32, %c0_i32_0 : i32, i32, i32
  }
  func.func @transform_1(%arg0: i32) -> (i32, i32) {
    %c0_i32 = arith.constant 0 : i32
    %c0_i32_0 = arith.constant 0 : i32
    %c0_i32_1 = arith.constant 0 : i32
    return %c0_i32, %c0_i32_0 : i32, i32
  }
  func.func @transform_2(%arg0: i32) -> (i32, i32) {
    %c0_i32 = arith.constant 0 : i32
    %c0_i32_0 = arith.constant 0 : i32
    %c0_i32_1 = arith.constant 0 : i32
    return %c0_i32, %c0_i32_0 : i32, i32
  }
  func.func @transform_3(%arg0: i32) -> (i32, i32, i32) {
    %c0_i32 = arith.constant 0 : i32
    %c0_i32_0 = arith.constant 0 : i32
    %c0_i32_1 = arith.constant 0 : i32
    return %arg0, %c0_i32, %c0_i32_0 : i32, i32, i32
  }
}

</mosaic_0001>

<bundles_post_ra>
// kernel: forward_nchw.1
= control target key start
LH: loop header
LB: loop body
LE: loop exit
PB: predicated region body
PF: predicated region fallthrough
CT: control target
= control target key end

     0   :  { %8 = vsyncpa [#allocation3], 0  ;;  %s2176_s15 = smov [#allocation2]   ;;  %s2177_s17 = smov 64   ;;  %s2520_s0 = inlined_call_operand.vmem [shape: f32[2,16,64], index: 0, kind: input, shape index: {}]   ;;  %s2521_s1 = inlined_call_operand.hbm [shape: bf16[1600,128], index: 1, kind: input, shape index: {}]   ;;  %s2522_s2 = inlined_call_operand.vmem [shape: f32[16,128], index: 2, kind: input, shape index: {}]   ;;  %s2523_s3 = inlined_call_operand.vmem [shape: f32[2,16,128], index: 3, kind: output, shape index: {}]  }
   0x1   :  { %s15_s14 = sshll.u32 %s2521_s1, 4  ;;  %s17_s16 = sshll.u32 %s2176_s15, 4  ;;  %s16_s14 = int_to_ptr.hbm [resolvable:$true] %s15_s14  ;;  %s18_s16 = int_to_ptr.vmem [resolvable:$true] %s17_s16 }
   0x2   :  { %s2178_s18 = smov 4  }
   0x3   :  { %23 = dma.hbm_to_vmem [thread:$0]  %s16_s14, 12800, %s18_s16, [#allocation3], %s2177_s17, %s2177_s17, %s2178_s18  }
   0x4   :  { %2174 = dma.done.wait [#allocation3], 12800  }
   0x5   :  { %2175 = vsyncadd [#allocation3], 4294954496  ;;  %v92_v0 = vld [vmem:[%s2520_s0] sm:$0xff]  ;;  %v93_v1 = vld [vmem:[%s2520_s0 + $0x8] sm:$0xff]  ;;  %v31_v17 = vlaneseq  ;;  %vm154_vm2 = vcmask 523264   ;;  %vm610_vm8 = vcmask 1041409  }
   0x6   :  { %v2088_v2 = vpack.i.bf16 %v93_v1, %v92_v0  ;;  %v1990_v3 = vld [vmem:[#allocation2 + $0x38] sm:$0xff]  ;;  %v1989_v5 = vld [vmem:[#allocation2 + $0x30] sm:$0xff]  ;;  %v1988_v9 = vld [vmem:[#allocation2 + $0x28] sm:$0xff]  ;;  %v118_v19 = vrot.slane %v93_v1, 1  ;;  %v117_v22 = vrot.slane %v92_v0, 1  ;;  %v97_v24 = vrot.slane %v93_v1, 7 }
   0x7   :  { %v1994_v4 = vld [vmem:[#allocation2 + $0x58] sm:$0xff]  ;;  %267 = vmatpush.bf16.msra.mxu0 %v1990_v3  ;;  %v94_v6 = vld [vmem:[%s2520_s0 + $0x10] sm:$0xff]  ;;  %v1992_v11 = vld [vmem:[#allocation2 + $0x48] sm:$0xff]  ;;  %v2216_v18 = vshrl.u32 %v31_v17, 7  ;;  %v96_v27 = vrot.slane %v92_v0, 7 }
   0x8   :  { %2089 = vrot.lane.b32.xlu0 %v2088_v2, %s2177_s17  ;;  %v95_v7 = vld [vmem:[%s2520_s0 + $0x18] sm:$0xff]  ;;  %290 = vmatpush.bf16.msra.mxu1 %v1994_v4  ;;  %v1993_v8 = vld [vmem:[#allocation2 + $0x50] sm:$0xff]  ;;  %v1987_v12 = vld [vmem:[#allocation2 + $0x20] sm:$0xff]  ;;  %v119_v20 = vrot.slane %v94_v6, 1  ;;  %v98_v36 = vrot.slane %v94_v6, 7 }
   0x9   :  { %v2093_v10 = vpack.i.bf16 %v95_v7, %v94_v6  ;;  %v1991_v13 = vld [vmem:[#allocation2 + $0x40] sm:$0xff]  ;;  %v1986_v14 = vld [vmem:[#allocation2 + $0x18] sm:$0xff]  ;;  %v1985_v15 = vld [vmem:[#allocation2 + $0x10] sm:$0xff]  ;;  %v33_v21 = vadd.s32 8, %v2216_v18  ;;  %vm121_vm0 = vcmp.lt.s32.totalorder %v2216_v18, 7  ;;  %v99_v28 = vrot.slane %v95_v7, 7 }
   0xa   :  { %v1984_v16 = vld [vmem:[#allocation2 + $0x8] sm:$0xff]  ;;  %v123_v26 = vsel %vm121_vm0, %v118_v19, %v119_v20  ;;  %v124_v29 = vsel %vm121_vm0, %v117_v22, %v118_v19  ;;  %vm100_vm3 = vcmp.lt.s32.totalorder %v2216_v18, 1  ;;  %v1983_v32 = vld [vmem:[#allocation2] sm:$0xff]  ;;  %v120_v35 = vrot.slane %v95_v7, 1  ;;  %v2002_v46 = vld [vmem:[#allocation2 + $0x98] sm:$0xff] }
   0xb   :  { %268 = vmatpush.bf16.msra.mxu0 %v1989_v5  ;;  %v47_v23 = vand.u32 15, %v33_v21  ;;  %v103_v33 = vsel %vm100_vm3, %v96_v27, %v97_v24  ;;  %v104_v34 = vsel %vm100_vm3, %v99_v28, %v96_v27  ;;  %v35_v37 = vadd.s32 24, %v2216_v18  ;;  %377 = vmatpush.bf16.msra.mxu2 %v2002_v46  ;;  %v2001_v47 = vld [vmem:[#allocation2 + $0x90] sm:$0xff]  ;;  %v2000_v3 = vld [vmem:[#allocation2 + $0x88] sm:$0xff]  ;;  %v1999_v4 = vld [vmem:[#allocation2 + $0x80] sm:$0xff] }
   0xc   :  { %291 = vmatpush.bf16.msra.mxu1 %v1993_v8  ;;  %v122_v38 = vsel %vm121_vm0, %v119_v20, %v120_v35  ;;  %v125_v39 = vsel %vm121_vm0, %v120_v35, %v117_v22  ;;  %v101_v40 = vsel %vm100_vm3, %v98_v36, %v99_v28  ;;  %v102_v42 = vsel %vm100_vm3, %v97_v24, %v98_v36  ;;  %v1998_v5 = vld [vmem:[#allocation2 + $0x78] sm:$0xff]  ;;  %v1997_v6 = vld [vmem:[#allocation2 + $0x70] sm:$0xff]  ;;  %v1996_v7 = vld [vmem:[#allocation2 + $0x68] sm:$0xff] }
   0xd   :  { %vm2220_vm1 = vcmp.eq.s32.totalorder %v47_v23, 15  ;;  %v61_v41 = vand.u32 15, %v35_v37  ;;  %v40_v48 = vand.u32 15, %v2216_v18  ;;  %v34_v50 = vadd.s32 16, %v2216_v18  ;;  %v1995_v8 = vld [vmem:[#allocation2 + $0x60] sm:$0xff]  ;;  %v2014_v17 = vld [vmem:[#allocation2 + $0xb8] sm:$0xff] }
   0xe   :  { %v135_v30 = vsel %vm2220_vm1, 0.0, %v123_v26  ;;  %v2013_v23 = vld [vmem:[#allocation2 + $0xb0] sm:$0xff]  ;;  %v2012_v26 = vld [vmem:[#allocation2 + $0xa8] sm:$0xff]  ;;  %v2054_v59 = vld [vmem:[#allocation2 + $0x238] sm:$0xff] }
   0xf   :  { %269 = vmatpush.bf16.msra.mxu0 %v1988_v9  ;;  %v160_v31 = vpack.c.bf16 %v135_v30, %v124_v29  ;;  %vm2245_vm4 = vcmp.eq.s32.totalorder %v61_v41, 15  ;;  %378 = vmatpush.bf16.msra.mxu2 %v2001_v47  ;;  %vm2253_vm5 = vcmp.eq.s32.totalorder %v40_v48, 0  ;;  %v54_v55 = vand.u32 15, %v34_v50  ;;  %v2018_v9 = vld [vmem:[#allocation2 + $0xd8] sm:$0xff] }
  0x10   :  { %2094 = vrot.lane.b32.xlu0 %v2093_v10, %s2177_s17  ;;  %292 = vmatpush.bf16.msra.mxu1 %v1992_v11  ;;  %v137_v44 = vsel %vm2245_vm4, 0.0, %v125_v39  ;;  %v113_v52 = vsel %vm2253_vm5, 0.0, %v104_v34  ;;  %v2017_v10 = vld [vmem:[#allocation2 + $0xd0] sm:$0xff]  ;;  %v2179_v29 = vmov 16.0   ;;  %v2074_v18 = vld [vmem:[#allocation2 + $0x298] sm:$0xff] }
  0x11   :  { %v162_v45 = vpack.c.bf16 %v137_v44, %v122_v38  ;;  %vm2262_vm6 = vcmp.eq.s32.totalorder %v54_v55, 0  ;;  %2108 = vrcp.f32 %v2179_v29 }
  0x12   :  { %v115_v61 = vsel %vm2262_vm6, 0.0, %v102_v42  ;;  %v2009_v42 = vld [vmem:[#allocation2 + $0x110] sm:$0xff] }
  0x13   :  { %270 = vmatpush.bf16.msra.mxu0 %v1987_v12  ;;  %379 = vmatpush.bf16.msra.mxu2 %v2000_v3  ;;  %v2016_v12 = vld [vmem:[#allocation2 + $0xc8] sm:$0xff] }
  0x14   :  { %293 = vmatpush.bf16.msra.mxu1 %v1991_v13 }
  0x17   :  { %271 = vmatpush.bf16.msra.mxu0 %v1986_v14  ;;  %1603 = vmatmul.msk.bf16.vlgmr.msra.gmra.mxu1 %vm154_vm2, %v160_v31  ;;  %v2098_v14 = vld [vmem:[%s2522_s2] ss:$0 sm:$0xff]  ;;  %v2109_v36 = vpop.eup %2108 }
  0x18   :  { %380 = vmatpush.bf16.msra.mxu2 %v1999_v4  ;;  %662 = vmatpush.bf16.msrb.mxu1 %v2018_v9  ;;  %v578_v39 = vmul.f32 16.0, %v2109_v36  ;;  %vm582_vm7 = vweird.f32 %v2109_v36 }
  0x1a   :  { %v579_v48 = vsub.f32 1.0, %v578_v39 }
  0x1b   :  { %272 = vmatpush.bf16.msra.mxu0 %v1985_v15  ;;  %v2015_v15 = vld [vmem:[#allocation2 + $0xc0] sm:$0xff] }
  0x1c   :  { %381 = vmatpush.bf16.msra.mxu2 %v1998_v5  ;;  %663 = vmatpush.bf16.msrb.mxu1 %v2017_v10  ;;  %v580_v55 = vmul.f32 %v2109_v36, %v579_v48 }
  0x1f   :  { %273 = vmatpush.bf16.msra.mxu0 %v1984_v16 }
  0x20   :  { %382 = vmatpush.bf16.msra.mxu2 %v1997_v6  ;;  %664 = vmatpush.bf16.msrb.mxu1 %v2016_v12 }
  0x23   :  { %274 = vmatpush.bf16.msra.mxu0 %v1983_v32  ;;  %v2011_v32 = vld [vmem:[#allocation2 + $0xa0] sm:$0xff] }
  0x24   :  { %383 = vmatpush.bf16.msra.mxu2 %v1996_v7  ;;  %665 = vmatpush.bf16.msrb.mxu1 %v2015_v15  ;;  %v2005_v15 = vld [vmem:[#allocation2 + $0xf0] sm:$0xff] }
  0x27   :  { %1604 = vmatmul.msk.bf16.gmra.mxu1 %vm154_vm2, %v162_v45 }
  0x28   :  { %384 = vmatpush.bf16.msra.mxu2 %v1995_v8  ;;  %666 = vmatpush.bf16.msrb.mxu1 %v2014_v17  ;;  %v2004_v17 = vld [vmem:[#allocation2 + $0xe8] sm:$0xff] }
  0x2c   :  { %667 = vmatpush.bf16.msrb.mxu1 %v2013_v23  ;;  %v2022_v23 = vld [vmem:[#allocation2 + $0x138] sm:$0xff] }
  0x30   :  { %668 = vmatpush.bf16.msrb.mxu1 %v2012_v26  ;;  %v2020_v26 = vld [vmem:[#allocation2 + $0x128] sm:$0xff] }
  0x34   :  { %669 = vmatpush.bf16.msrb.mxu1 %v2011_v32 }
  0x7a   :  { %v2090_v51 = vpop.permute.xlu0 %2089 }
  0x7b   :  { %v2092_v53 = vunpack.i.h.bf16 %v2090_v51  ;;  %v2091_v54 = vunpack.i.l.bf16 %v2090_v51  ;;  %v2008_v51 = vld [vmem:[#allocation2 + $0x108] sm:$0xff] }
  0x7d   :  { %v155_v56 = vsel %vm154_vm2, %v113_v52, %v2091_v54  ;;  %v156_v57 = vsel %vm154_vm2, %v103_v33, %v2092_v53 }
  0x7e   :  { %v159_v58 = vpack.c.bf16 %v156_v57, %v155_v56 }
  0x80   :  { %275 = vmatmul.bf16.vlgmr.msra.gmra.mxu0 %v159_v58  ;;  %v2007_v58 = vld [vmem:[#allocation2 + $0x100] sm:$0xff] }
  0x82   :  { %v2095_v60 = vpop.permute.xlu0 %2094 }
  0x83   :  { %v2097_v62 = vunpack.i.h.bf16 %v2095_v60  ;;  %v2096_v63 = vunpack.i.l.bf16 %v2095_v60 }
  0x85   :  { %v157_v0 = vsel %vm154_vm2, %v115_v61, %v2096_v63  ;;  %v158_v1 = vsel %vm154_vm2, %v101_v40, %v2097_v62  ;;  %v2010_v40 = vld [vmem:[#allocation2 + $0x118] sm:$0xff]  ;;  %v581_v62 = vadd.f32 %v2109_v36, %v580_v55 }
  0x86   :  { %v161_v2 = vpack.c.bf16 %v158_v1, %v157_v0  ;;  %468 = vmatpush.bf16.msra.mxu3 %v2010_v40  ;;  %v2042_v55 = vld [vmem:[#allocation2 + $0x1d8] sm:$0xff] }
  0x8a   :  { %469 = vmatpush.bf16.msra.mxu3 %v2009_v42 }
  0x8e   :  { %470 = vmatpush.bf16.msra.mxu3 %v2008_v51 }
  0x90   :  { %280 = vmatmul.bf16.gmra.mxu0 %v161_v2  ;;  %v2289_v2 = vsel %vm582_vm7, %v2109_v36, %v581_v62  ;;  %v2049_v62 = vld [vmem:[#allocation2 + $0x210] sm:$0xff] }
  0x92   :  { %471 = vmatpush.bf16.msra.mxu3 %v2007_v58  ;;  %v2303_v58 = vld [vmem:[%s2522_s2 + $0x3] ss:$0 sm:$0xff] }
  0x94   :  { %v295_v11 = vpop.f32.mrf.mxu1 }
  0x9c   :  { %v297_v19 = vpop.f32.mrf.mxu1 }
  0xa4   :  { %v300_v33 = vpop.f32.mrf.mxu1 }
  0xac   :  { %v302_v47 = vpop.f32.mrf.mxu1 }
  0xfd   :  { %v276_v13 = vpop.f32.mrf.mxu0 }
  0xfe   :  { %v277_v16 = vadd.f32 %v2098_v14, %v276_v13 }
 0x100   :  { %v296_v21 = vadd.f32 %v295_v11, %v277_v16  ;;  %v2026_v16 = vld [vmem:[#allocation2 + $0x158] sm:$0xff] }
 0x101   :  { %743 = vmatpush.bf16.msrb.mxu0 %v2026_v16  ;;  %v2031_v16 = vld [vmem:[#allocation2 + $0x180] sm:$0xff] }
 0x102   :  { %v2273_v27 = vmax.f32 %v296_v21, 0.0  ;;  %v2024_v21 = vld [vmem:[#allocation2 + $0x148] sm:$0xff] }
 0x105   :  { %v278_v20 = vpop.f32.mrf.mxu0 }
 0x106   :  { %v279_v22 = vadd.f32 %v2098_v14, %v278_v20  ;;  %v2003_v20 = vld [vmem:[#allocation2 + $0xe0] sm:$0xff] }
 0x108   :  { %v298_v24 = vadd.f32 %v297_v19, %v279_v22  ;;  %v2025_v19 = vld [vmem:[#allocation2 + $0x150] sm:$0xff]  ;;  %v2023_v22 = vld [vmem:[#allocation2 + $0x140] sm:$0xff] }
 0x109   :  { %744 = vmatpush.bf16.msrb.mxu0 %v2025_v19  ;;  %v2036_v19 = vld [vmem:[#allocation2 + $0x1a8] sm:$0xff] }
 0x10a   :  { %v2275_v28 = vmax.f32 %v298_v24, 0.0  ;;  %v2021_v24 = vld [vmem:[#allocation2 + $0x130] sm:$0xff] }
 0x10c   :  { %v563_v30 = vadd.f32 %v2275_v28, %v2273_v27  ;;  %v309_v31 = vpack.c.bf16 %v2275_v28, %v2273_v27 }
 0x10d   :  { %v281_v34 = vpop.f32.mrf.mxu0  ;;  %745 = vmatpush.bf16.msrb.mxu0 %v2024_v21  ;;  %v2045_v21 = vld [vmem:[#allocation2 + $0x1f0] sm:$0xff] }
 0x10e   :  { %v564_v35 = vrot.slane %v563_v30, 4  ;;  %385 = vmatmul.bf16.vlgmr.msra.gmra.mxu2 %v309_v31  ;;  %v282_v38 = vadd.f32 %v2098_v14, %v281_v34  ;;  %v2099_v31 = vld [vmem:[%s2522_s2 + $0x1] ss:$0 sm:$0xff] }
 0x110   :  { %v565_v37 = vadd.f32 %v564_v35, %v563_v30  ;;  %v301_v45 = vadd.f32 %v300_v33, %v282_v38  ;;  %v2019_v30 = vld [vmem:[#allocation2 + $0x120] sm:$0xff] }
 0x111   :  { %746 = vmatpush.bf16.msrb.mxu0 %v2023_v22 }
 0x112   :  { %v566_v44 = vrot.slane %v565_v37, 2  ;;  %v2281_v53 = vmax.f32 %v301_v45, 0.0  ;;  %v2100_v45 = vld [vmem:[%s2522_s2 + $0x2] ss:$0 sm:$0xff] }
 0x114   :  { %v567_v52 = vadd.f32 %v566_v44, %v565_v37 }
 0x115   :  { %v283_v41 = vpop.f32.mrf.mxu0  ;;  %747 = vmatpush.bf16.msrb.mxu0 %v2022_v23 }
 0x116   :  { %v284_v46 = vadd.f32 %v2098_v14, %v283_v41  ;;  %v568_v60 = vrot.slane %v567_v52, 1  ;;  %v2006_v14 = vld [vmem:[#allocation2 + $0xf8] sm:$0xff] }
 0x117   :  { %472 = vmatpush.bf16.msra.mxu3 %v2006_v14  ;;  %v2046_v14 = vld [vmem:[#allocation2 + $0x1f8] sm:$0xff] }
 0x118   :  { %v303_v50 = vadd.f32 %v302_v47, %v284_v46  ;;  %v569_v1 = vadd.f32 %v568_v60, %v567_v52  ;;  %v2040_v60 = vld [vmem:[#allocation2 + $0x1c8] sm:$0xff] }
 0x119   :  { %748 = vmatpush.bf16.msrb.mxu0 %v2021_v24  ;;  %v2030_v24 = vld [vmem:[#allocation2 + $0x178] sm:$0xff] }
 0x11a   :  { %v2283_v54 = vmax.f32 %v303_v50, 0.0  ;;  %v584_v5 = vmul.f32 %v2289_v2, %v569_v1 }
 0x11b   :  { %473 = vmatpush.bf16.msra.mxu3 %v2005_v15 }
 0x11c   :  { %v570_v56 = vadd.f32 %v2283_v54, %v2281_v53  ;;  %v310_v57 = vpack.c.bf16 %v2283_v54, %v2281_v53  ;;  %v586_v8 = vpack.c.bf16 %v584_v5, %v584_v5  ;;  %v2033_v5 = vld [vmem:[#allocation2 + $0x190] sm:$0xff] }
 0x11d   :  { %749 = vmatpush.bf16.msrb.mxu0 %v2020_v26 }
 0x11e   :  { %v571_v61 = vrot.slane %v570_v56, 4  ;;  %390 = vmatmul.bf16.gmra.mxu2 %v310_v57  ;;  %v608_v10 = vunpack.c.l.b16 %v586_v8  ;;  %v2050_v57 = vld [vmem:[#allocation2 + $0x218] sm:$0xff]  ;;  %v2047_v8 = vld [vmem:[#allocation2 + $0x200] sm:$0xff] }
 0x11f   :  { %474 = vmatpush.bf16.msra.mxu3 %v2004_v17  ;;  %1051 = vmatpush.bf16.msra.mxu1 %v2050_v57  ;;  %v2102_v17 = vld [vmem:[%s2522_s2 + $0x4] ss:$0 sm:$0xff] }
 0x120   :  { %v572_v63 = vadd.f32 %v571_v61, %v570_v56  ;;  %v2041_v56 = vld [vmem:[#allocation2 + $0x1d0] sm:$0xff] }
 0x121   :  { %750 = vmatpush.bf16.msrb.mxu0 %v2019_v30 }
 0x122   :  { %v573_v0 = vrot.slane %v572_v63, 2 }
 0x123   :  { %475 = vmatpush.bf16.msra.mxu3 %v2003_v20  ;;  %1052 = vmatpush.bf16.msra.mxu1 %v2049_v62 }
 0x124   :  { %v574_v3 = vadd.f32 %v573_v0, %v572_v63  ;;  %v2034_v0 = vld [vmem:[#allocation2 + $0x198] sm:$0xff] }
 0x125   :  { %1013 = vmatpush.bf16.msrb.mxu2 %v2034_v0 }
 0x126   :  { %v575_v4 = vrot.slane %v574_v3, 1 }
 0x127   :  { %1032 = vmatpush.bf16.msrb.mxu3 %v2042_v55 }
 0x128   :  { %v576_v6 = vadd.f32 %v575_v4, %v574_v3  ;;  %v2039_v3 = vld [vmem:[#allocation2 + $0x1c0] sm:$0xff]  ;;  %v2048_v4 = vld [vmem:[#allocation2 + $0x208] sm:$0xff] }
 0x129   :  { %1053 = vmatpush.bf16.msra.mxu1 %v2048_v4  ;;  %1014 = vmatpush.bf16.msrb.mxu2 %v2033_v5 }
 0x12a   :  { %v585_v7 = vmul.f32 %v2289_v2, %v576_v6  ;;  %v2038_v6 = vld [vmem:[#allocation2 + $0x1b8] sm:$0xff] }
 0x12b   :  { %1033 = vmatpush.bf16.msrb.mxu3 %v2041_v56 }
 0x12c   :  { %v587_v9 = vpack.c.bf16 %v585_v7, %v585_v7 }
 0x12d   :  { %1054 = vmatpush.bf16.msra.mxu1 %v2047_v8 }
 0x12e   :  { %v609_v11 = vunpack.c.l.b16 %v587_v9 }
 0x12f   :  { %1034 = vmatpush.bf16.msrb.mxu3 %v2040_v60 }
 0x130   :  { %v611_v12 = vsel %vm610_vm8, %v609_v11, %v608_v10  ;;  %v2032_v10 = vld [vmem:[#allocation2 + $0x188] sm:$0xff] }
 0x131   :  { %v612_v13 = vpack.c.b16 %v611_v12, %v611_v12  ;;  %1015 = vmatpush.bf16.msrb.mxu2 %v2032_v10  ;;  %1055 = vmatpush.bf16.msra.mxu1 %v2046_v14 }
 0x133   :  { %670 = vmatmul.bf16.vlgmr.msrb.gmra.mxu1 %v612_v13  ;;  %1035 = vmatpush.bf16.msrb.mxu3 %v2039_v3  ;;  %v2037_v13 = vld [vmem:[#allocation2 + $0x1b0] sm:$0xff] }
 0x135   :  { %1016 = vmatpush.bf16.msrb.mxu2 %v2031_v16  ;;  %1056 = vmatpush.bf16.msra.mxu1 %v2045_v21  ;;  %v2055_v21 = vld [vmem:[#allocation2 + $0x240] sm:$0xff] }
 0x137   :  { %1036 = vmatpush.bf16.msrb.mxu3 %v2038_v6 }
 0x139   :  { %1017 = vmatpush.bf16.msrb.mxu2 %v2030_v24 }
 0x13b   :  { %1037 = vmatpush.bf16.msrb.mxu3 %v2037_v13 }
 0x13f   :  { %1038 = vmatpush.bf16.msrb.mxu3 %v2036_v19 }
 0x191   :  { %v386_v29 = vpop.f32.mrf.mxu2 }
 0x192   :  { %v387_v32 = vadd.f32 %v2099_v31, %v386_v29 }
 0x194   :  { %v396_v35 = vmax.f32 %v387_v32, 0.0 }
 0x199   :  { %v388_v33 = vpop.f32.mrf.mxu2 }
 0x19a   :  { %v389_v34 = vadd.f32 %v2099_v31, %v388_v33 }
 0x19c   :  { %v397_v36 = vmax.f32 %v389_v34, 0.0  ;;  %v2044_v34 = vld [vmem:[#allocation2 + $0x1e8] sm:$0xff] }
 0x19d   :  { %1057 = vmatpush.bf16.msra.mxu1 %v2044_v34 }
 0x19e   :  { %v400_v37 = vpack.c.bf16 %v397_v36, %v396_v35  ;;  %v2029_v35 = vld [vmem:[#allocation2 + $0x170] sm:$0xff] }
 0x19f   :  { %1018 = vmatpush.bf16.msrb.mxu2 %v2029_v35 }
 0x1a0   :  { %476 = vmatmul.bf16.vlgmr.msra.gmra.mxu3 %v400_v37 }
 0x1a1   :  { %v391_v38 = vpop.f32.mrf.mxu2 }
 0x1a2   :  { %v392_v39 = vadd.f32 %v2099_v31, %v391_v38 }
 0x1a4   :  { %v398_v42 = vmax.f32 %v392_v39, 0.0 }
 0x1a9   :  { %v393_v40 = vpop.f32.mrf.mxu2 }
 0x1aa   :  { %v394_v41 = vadd.f32 %v2099_v31, %v393_v40  ;;  %v2035_v31 = vld [vmem:[#allocation2 + $0x1a0] sm:$0xff]  ;;  %v2028_v40 = vld [vmem:[#allocation2 + $0x168] sm:$0xff] }
 0x1ab   :  { %1039 = vmatpush.bf16.msrb.mxu3 %v2035_v31  ;;  %1019 = vmatpush.bf16.msrb.mxu2 %v2028_v40 }
 0x1ac   :  { %v399_v44 = vmax.f32 %v394_v41, 0.0  ;;  %v2043_v41 = vld [vmem:[#allocation2 + $0x1e0] sm:$0xff] }
 0x1ad   :  { %1058 = vmatpush.bf16.msra.mxu1 %v2043_v41 }
 0x1ae   :  { %v401_v46 = vpack.c.bf16 %v399_v44, %v398_v42 }
 0x1af   :  { %1419 = vmatpush.bf16.msra.mxu3 %v2074_v18 }
 0x1b0   :  { %481 = vmatmul.bf16.gmra.mxu3 %v401_v46  ;;  %v671_v47 = vpop.f32.mrf.mxu1 }
 0x1b1   :  { %v672_v48 = vadd.f32 %v2100_v45, %v671_v47 }
 0x1b3   :  { %v675_v50 = vmax.f32 %v672_v48, 0.0 }
 0x1b5   :  { %v676_v51 = vpack.c.bf16 %v675_v50, %v675_v50 }
 0x1b7   :  { %751 = vmatmul.bf16.vlgmr.msrb.gmra.mxu0 %v676_v51  ;;  %v2027_v51 = vld [vmem:[#allocation2 + $0x160] sm:$0xff] }
 0x1b8   :  { %v673_v52 = vpop.f32.mrf.mxu1  ;;  %1020 = vmatpush.bf16.msrb.mxu2 %v2027_v51 }
 0x223   :  { %v477_v61 = vpop.f32.mrf.mxu3 }
 0x224   :  { %v478_v63 = vadd.f32 %v2303_v58, %v477_v61 }
 0x226   :  { %v1669_v1 = vmul.f32 -1.442695, %v478_v63 }
 0x228   :  { %2110 = vpow2.f32 %v1669_v1 }
 0x22b   :  { %v479_v7 = vpop.f32.mrf.mxu3 }
 0x22c   :  { %v480_v9 = vadd.f32 %v2303_v58, %v479_v7 }
 0x22e   :  { %v2111_v11 = vpop.eup %2110  ;;  %v1670_v12 = vmul.f32 -1.442695, %v480_v9 }
 0x22f   :  { %v2307_v15 = vadd.f32 1.0, %v2111_v11 }
 0x230   :  { %2112 = vpow2.f32 %v1670_v12 }
 0x231   :  { %2114 = vrcp.f32 %v2307_v15  ;;  %v512_v60 = vand.u32 2147483647, %v2307_v15  ;;  %v514_v62 = vand.u32 2147483648, %v2307_v15  ;;  %vm508_vm10 = vweird.f32 %v2307_v15 }
 0x233   :  { %v482_v20 = vpop.f32.mrf.mxu3  ;;  %vm2340_vm11 = vcmp.eq.f32.partialorder %v512_v60, 8.507059e+37  ;;  %v515_v8 = vor.u32 1.1754944e-38, %v514_v62 }
 0x234   :  { %v483_v22 = vadd.f32 %v2303_v58, %v482_v20  ;;  %v752_v23 = vpop.f32.mrf.mxu0 }
 0x235   :  { %v753_v26 = vadd.f32 %v2102_v17, %v752_v23 }
 0x236   :  { %v2113_v29 = vpop.eup %2112  ;;  %v1671_v30 = vmul.f32 -1.442695, %v483_v22 }
 0x237   :  { %v2314_v32 = vadd.f32 1.0, %v2113_v29  ;;  %v1737_v33 = vmul.f32 -1.442695, %v753_v26  ;;  %v2317_v36 = vpop.eup %2114 }
 0x238   :  { %2116 = vpow2.f32 %v1671_v30  ;;  %v504_v42 = vmul.f32 %v2317_v36, %v2307_v15  ;;  %vm509_vm9 = vweird.f32 %v2317_v36 }
 0x239   :  { %2118 = vrcp.f32 %v2314_v32  ;;  %vm523_vm13 = vweird.f32 %v2314_v32  ;;  %v529_v10 = vand.u32 2147483648, %v2314_v32  ;;  %vm2348_vm14 = vmor %vm508_vm10, %vm509_vm9  ;;  %v527_v13 = vand.u32 2147483647, %v2314_v32 }
 0x23a   :  { %2120 = vpow2.f32 %v1737_v33  ;;  %v505_v52 = vsub.f32 1.0, %v504_v42  ;;  %v2058_v42 = vld [vmem:[#allocation2 + $0x258] sm:$0xff] }
 0x23b   :  { %v484_v37 = vpop.f32.mrf.mxu3  ;;  %1142 = vmatpush.bf16.msra.mxu0 %v2058_v42 }
 0x23c   :  { %v485_v38 = vadd.f32 %v2303_v58, %v484_v37  ;;  %v754_v39 = vpop.f32.mrf.mxu0  ;;  %v506_v57 = vmul.f32 %v2317_v36, %v505_v52 }
 0x23e   :  { %v2117_v44 = vpop.eup %2116  ;;  %v1672_v45 = vmul.f32 -1.442695, %v485_v38  ;;  %v507_v3 = vadd.f32 %v2317_v36, %v506_v57 }
 0x23f   :  { %v2322_v46 = vpop.eup %2118  ;;  %v2324_v47 = vadd.f32 1.0, %v2117_v44 }
 0x240   :  { %v2121_v48 = vpop.eup %2120  ;;  %v519_v50 = vmul.f32 %v2322_v46, %v2314_v32  ;;  %2122 = vpow2.f32 %v1672_v45  ;;  %vm524_vm12 = vweird.f32 %v2322_v46  ;;  %v511_v16 = vsel %vm2348_vm14, %v2317_v36, %v507_v3 }
 0x241   :  { %2124 = vrcp.f32 %v2324_v47  ;;  %v759_v55 = vadd.f32 1.0, %v2121_v48  ;;  %v544_v14 = vand.u32 2147483648, %v2324_v47  ;;  %vm538_vm2 = vweird.f32 %v2324_v47  ;;  %vm2359_vm7 = vmor %vm523_vm13, %vm524_vm12 }
 0x242   :  { %v520_v56 = vsub.f32 1.0, %v519_v50  ;;  %v542_v19 = vand.u32 2147483647, %v2324_v47  ;;  %v516_v31 = vsel %vm2340_vm11, %v515_v8, %v511_v16  ;;  %vm528_vm12 = vcmp.eq.f32.partialorder %v527_v13, 8.507059e+37 }
 0x243   :  { %2126 = vrcp.f32 %v759_v55  ;;  %v771_v20 = vand.u32 2147483648, %v759_v55  ;;  %v769_v26 = vand.u32 2147483647, %v759_v55  ;;  %v530_v32 = vor.u32 1.1754944e-38, %v529_v10 }
 0x244   :  { %v521_v63 = vmul.f32 %v2322_v46, %v520_v56  ;;  %v545_v34 = vor.u32 1.1754944e-38, %v544_v14  ;;  %vm765_vm13 = vweird.f32 %v759_v55 }
 0x245   :  { %v772_v39 = vor.u32 1.1754944e-38, %v771_v20  ;;  %v2056_v20 = vld [vmem:[#allocation2 + $0x248] sm:$0xff] }
 0x246   :  { %v2123_v58 = vpop.eup %2122  ;;  %v522_v9 = vadd.f32 %v2322_v46, %v521_v63 }
 0x247   :  { %v2125_v61 = vpop.eup %2124  ;;  %v2333_v0 = vadd.f32 1.0, %v2123_v58 }
 0x248   :  { %v534_v1 = vmul.f32 %v2125_v61, %v2324_v47  ;;  %vm539_vm15 = vweird.f32 %v2125_v61  ;;  %v526_v24 = vsel %vm2359_vm7, %v2322_v46, %v522_v9  ;;  %v775_v47 = vmul.f32 %v516_v31, %v2273_v27  ;;  %v2103_v31 = vld [vmem:[%s2522_s2 + $0x5] ss:$0 sm:$0xff] }
 0x249   :  { %2128 = vrcp.f32 %v2333_v0  ;;  %v2127_v4 = vpop.eup %2126  ;;  %vm2366_vm10 = vmor %vm538_vm2, %vm539_vm15  ;;  %v559_v37 = vand.u32 2147483648, %v2333_v0  ;;  %v531_v38 = vsel %vm528_vm12, %v530_v32, %v526_v24  ;;  %vm543_vm15 = vcmp.eq.f32.partialorder %v542_v19, 8.507059e+37  ;;  %v2057_v19 = vld [vmem:[#allocation2 + $0x250] sm:$0xff]  ;;  %v2051_v24 = vld [vmem:[#allocation2 + $0x220] sm:$0xff] }
 0x24a   :  { %v535_v5 = vsub.f32 1.0, %v534_v1  ;;  %v761_v7 = vmul.f32 %v2127_v4, %v759_v55  ;;  %vm766_vm9 = vweird.f32 %v2127_v4  ;;  %v557_v40 = vand.u32 2147483647, %v2333_v0  ;;  %vm1842_vm12 = vmneg %vm2220_vm1  ;;  %1143 = vmatpush.bf16.msra.mxu0 %v2057_v19 }
 0x24b   :  { %vm767_vm14 = vmor %vm765_vm13, %vm766_vm9  ;;  %vm770_vm2 = vcmp.eq.f32.partialorder %v769_v26, 8.507059e+37  ;;  %v776_v48 = vmul.f32 %v531_v38, %v2275_v28  ;;  %vm553_vm7 = vweird.f32 %v2333_v0  ;;  %v560_v55 = vor.u32 1.1754944e-38, %v559_v37 }
 0x24c   :  { %v536_v11 = vmul.f32 %v2125_v61, %v535_v5  ;;  %v762_v15 = vsub.f32 1.0, %v761_v7  ;;  %vm2180_vm13 = vmmov 1   ;;  %vm1834_vm1 = vmneg %vm2253_vm5 }
 0x24e   :  { %v537_v17 = vadd.f32 %v2125_v61, %v536_v11  ;;  %v763_v23 = vmul.f32 %v2127_v4, %v762_v15  ;;  %1144 = vmatpush.bf16.msra.mxu0 %v2056_v20 }
 0x24f   :  { %v2129_v22 = vpop.eup %2128 }
 0x250   :  { %v549_v30 = vmul.f32 %v2129_v22, %v2333_v0  ;;  %v541_v33 = vsel %vm2366_vm10, %v2125_v61, %v537_v17  ;;  %v764_v35 = vadd.f32 %v2127_v4, %v763_v23  ;;  %vm554_vm11 = vweird.f32 %v2129_v22  ;;  %v2052_v23 = vld [vmem:[#allocation2 + $0x228] sm:$0xff] }
 0x251   :  { %v546_v45 = vsel %vm543_vm15, %v545_v34, %v541_v33  ;;  %vm555_vm9 = vmor %vm553_vm7, %vm554_vm11  ;;  %vm558_vm10 = vcmp.eq.f32.partialorder %v557_v40, 8.507059e+37  ;;  %v2072_v33 = vld [vmem:[#allocation2 + $0x288] sm:$0xff] }
 0x252   :  { %v550_v36 = vsub.f32 1.0, %v549_v30  ;;  %v768_v41 = vsel %vm767_vm14, %v2127_v4, %v764_v35  ;;  %v777_v56 = vmul.f32 %v546_v45, %v2281_v53  ;;  %vm1843_vm14 = vmpackc.low %vm1842_vm12, %vm2180_vm13  ;;  %1145 = vmatpush.bf16.msra.mxu0 %v2055_v21  ;;  %v2073_v30 = vld [vmem:[#allocation2 + $0x290] sm:$0xff] }
 0x253   :  { %v773_v46 = vsel %vm770_vm2, %v772_v39, %v768_v41  ;;  %vm1835_vm15 = vmpackc.low %vm2180_vm13, %vm1834_vm1  ;;  %1420 = vmatpush.bf16.msra.mxu3 %v2073_v30  ;;  %v2070_v41 = vld [vmem:[#allocation2 + $0x278] sm:$0xff]  ;;  %v2069_v45 = vld [vmem:[#allocation2 + $0x270] sm:$0xff] }
 0x254   :  { %v551_v44 = vmul.f32 %v2129_v22, %v550_v36  ;;  %v780_v50 = vrot.slane %v773_v46, 1  ;;  %v781_v51 = vperm.slane %v773_v46, 0  ;;  %vm1846_vm2 = vmneg %vm2245_vm4  ;;  %v2071_v36 = vld [vmem:[#allocation2 + $0x280] sm:$0xff]  ;;  %v2061_v30 = vld [vmem:[#allocation2 + $0x2b0] sm:$0xff] }
 0x255   :  { %vm1847_vm5 = vmpackc.low %vm1846_vm2, %vm2180_vm13 }
 0x256   :  { %v552_v52 = vadd.f32 %v2129_v22, %v551_v44  ;;  %v782_v57 = vperm.slane %v780_v50, 0  ;;  %v785_v58 = vmul.f32 %v781_v51, %v775_v47  ;;  %v786_v60 = vmul.f32 %v781_v51, %v776_v48  ;;  %vm1838_vm11 = vmneg %vm2262_vm6  ;;  %1146 = vmatpush.bf16.msra.mxu0 %v2054_v59 }
 0x257   :  { %vm1839_vm4 = vmpackc.low %vm2180_vm13, %vm1838_vm11  ;;  %1421 = vmatpush.bf16.msra.mxu3 %v2072_v33  ;;  %v2082_v33 = vld [vmem:[#allocation2 + $0x318] sm:$0xff] }
 0x258   :  { %v556_v61 = vsel %vm555_vm9, %v2129_v22, %v552_v52  ;;  %v787_v63 = vmul.f32 %v782_v57, %v777_v56  ;;  %v801_v27 = vrot.slane %v785_v58, 1  ;;  %v802_v1 = vrot.slane %v786_v60, 1  ;;  %v2053_v22 = vld [vmem:[#allocation2 + $0x230] sm:$0xff]  ;;  %v2068_v52 = vld [vmem:[#allocation2 + $0x268] sm:$0xff]  ;;  %1500 = vmatpush.bf16.msrb.mxu1 %v2082_v33 }
 0x259   :  { %v561_v62 = vsel %vm558_vm10, %v560_v55, %v556_v61  ;;  %v814_v3 = vpack.c.bf16 %v786_v60, %v785_v58  ;;  %v789_v53 = vrot.slane %v785_v58, 7  ;;  %v790_v5 = vrot.slane %v786_v60, 7  ;;  %v2067_v61 = vld [vmem:[#allocation2 + $0x260] sm:$0xff] }
 0x25a   :  { %v778_v28 = vmul.f32 %v561_v62, %v2283_v54  ;;  %v803_v0 = vrot.slane %v787_v63, 1  ;;  %v807_v7 = vsel %vm121_vm0, %v801_v27, %v802_v1  ;;  %v791_v14 = vrot.slane %v787_v63, 7  ;;  %1147 = vmatpush.bf16.msra.mxu0 %v2053_v22 }
 0x25b   :  { %1040 = vmatmul.bf16.vlgmr.msrb.gmra.mxu3 %v814_v3  ;;  %v795_v8 = vsel %vm100_vm3, %v789_v53, %v790_v5 }
 0x25c   :  { %v788_v4 = vmul.f32 %v782_v57, %v778_v28  ;;  %v806_v6 = vsel %vm121_vm0, %v802_v1, %v803_v0  ;;  %v794_v43 = vsel %vm100_vm3, %v790_v5, %v791_v14  ;;  %1422 = vmatpush.bf16.msra.mxu3 %v2071_v36  ;;  %v2066_v1 = vld [vmem:[#allocation2 + $0x2d8] sm:$0xff] }
 0x25d   :  { %v1844_v25 = vpack.c.bf16 %v806_v6, %v807_v7  ;;  %1233 = vmatpush.bf16.msra.mxu2 %v2066_v1 }
 0x25e   :  { %v792_v54 = vrot.slane %v788_v4, 7  ;;  %v804_v11 = vrot.slane %v788_v4, 1  ;;  %v817_v12 = vpack.c.bf16 %v788_v4, %v787_v63  ;;  %1148 = vmatpush.bf16.msra.mxu0 %v2052_v23 }
 0x25f   :  { %1845 = vmatmul.msk.bf16.vlgmr.msra.gmra.mxu1 %vm1843_vm14, %v1844_v25  ;;  %v2064_v25 = vld [vmem:[#allocation2 + $0x2c8] sm:$0xff] }
 0x260   :  { %v796_v9 = vsel %vm100_vm3, %v792_v54, %v789_v53  ;;  %v805_v49 = vsel %vm121_vm0, %v803_v0, %v804_v11  ;;  %v808_v13 = vsel %vm121_vm0, %v804_v11, %v801_v27  ;;  %v793_v16 = vsel %vm100_vm3, %v791_v14, %v792_v54  ;;  %1423 = vmatpush.bf16.msra.mxu3 %v2070_v41  ;;  %v2065_v0 = vld [vmem:[#allocation2 + $0x2d0] sm:$0xff] }
 0x261   :  { %v1836_v10 = vpack.c.bf16 %v795_v8, %v796_v9  ;;  %v1848_v15 = vpack.c.bf16 %v808_v13, %v805_v49  ;;  %v1840_v17 = vpack.c.bf16 %v793_v16, %v794_v43  ;;  %1234 = vmatpush.bf16.msra.mxu2 %v2065_v0 }
 0x262   :  { %1149 = vmatpush.bf16.msra.mxu0 %v2051_v24 }
 0x263   :  { %1837 = vmatmul.msk.bf16.vlgmr.msrb.gmra.mxu2 %vm1835_vm15, %v1836_v10 }
 0x264   :  { %1424 = vmatpush.bf16.msra.mxu3 %v2069_v45 }
 0x265   :  { %1235 = vmatpush.bf16.msra.mxu2 %v2064_v25 }
 0x268   :  { %1425 = vmatpush.bf16.msra.mxu3 %v2068_v52  ;;  %v2075_v52 = vld [vmem:[#allocation2 + $0x2e0] sm:$0xff] }
 0x26b   :  { %1045 = vmatmul.bf16.gmra.mxu3 %v817_v12  ;;  %v2063_v12 = vld [vmem:[#allocation2 + $0x2c0] sm:$0xff] }
 0x26c   :  { %1426 = vmatpush.bf16.msra.mxu3 %v2067_v61  ;;  %1236 = vmatpush.bf16.msra.mxu2 %v2063_v12 }
 0x26f   :  { %1849 = vmatmul.msk.bf16.gmra.mxu1 %vm1847_vm5, %v1848_v15 }
 0x273   :  { %1841 = vmatmul.msk.bf16.gmra.mxu2 %vm1839_vm4, %v1840_v17 }
 0x2dc   :  { %v1060_v29 = vpop.f32.mrf.mxu1 }
 0x2de   :  { %v1041_v26 = vpop.f32.mrf.mxu3 }
 0x2e4   :  { %v1062_v38 = vpop.f32.mrf.mxu1 }
 0x2e6   :  { %v1022_v32 = vpop.f32.mrf.mxu2  ;;  %v1043_v35 = vpop.f32.mrf.mxu3 }
 0x2e7   :  { %v1023_v34 = vadd.f32 %v2103_v31, %v1022_v32  ;;  %v2059_v32 = vld [vmem:[#allocation2 + $0x2a0] sm:$0xff] }
 0x2e9   :  { %v1042_v37 = vadd.f32 %v1041_v26, %v1023_v34  ;;  %v2081_v34 = vld [vmem:[#allocation2 + $0x310] sm:$0xff] }
 0x2ea   :  { %1501 = vmatpush.bf16.msrb.mxu1 %v2081_v34 }
 0x2eb   :  { %v1061_v42 = vadd.f32 %v1060_v29, %v1042_v37  ;;  %v2062_v29 = vld [vmem:[#allocation2 + $0x2b8] sm:$0xff] }
 0x2ec   :  { %v1065_v57 = vpop.f32.mrf.mxu1  ;;  %1237 = vmatpush.bf16.msra.mxu2 %v2062_v29  ;;  %v2078_v37 = vld [vmem:[#allocation2 + $0x2f8] sm:$0xff] }
 0x2ed   :  { %v2413_v47 = vmax.f32 %v1061_v42, 0.0 }
 0x2ee   :  { %v1024_v39 = vpop.f32.mrf.mxu2  ;;  %v1046_v50 = vpop.f32.mrf.mxu3 }
 0x2ef   :  { %v1025_v40 = vadd.f32 %v2103_v31, %v1024_v39  ;;  %v2077_v39 = vld [vmem:[#allocation2 + $0x2f0] sm:$0xff] }
 0x2f0   :  { %1238 = vmatpush.bf16.msra.mxu2 %v2061_v30 }
 0x2f1   :  { %v1044_v44 = vadd.f32 %v1043_v35, %v1025_v40  ;;  %v2079_v35 = vld [vmem:[#allocation2 + $0x300] sm:$0xff] }
 0x2f3   :  { %v1063_v46 = vadd.f32 %v1062_v38, %v1044_v44  ;;  %v2104_v38 = vld [vmem:[%s2522_s2 + $0x6] ss:$0 sm:$0xff]  ;;  %v2076_v44 = vld [vmem:[#allocation2 + $0x2e8] sm:$0xff] }
 0x2f4   :  { %v1067_v6 = vpop.f32.mrf.mxu1 }
 0x2f5   :  { %v2415_v48 = vmax.f32 %v1063_v46, 0.0 }
 0x2f6   :  { %v1027_v51 = vpop.f32.mrf.mxu2  ;;  %v1048_v3 = vpop.f32.mrf.mxu3 }
 0x2f7   :  { %v1328_v55 = vadd.f32 %v2415_v48, %v2413_v47  ;;  %v1074_v56 = vpack.c.bf16 %v2415_v48, %v2413_v47  ;;  %v1028_v60 = vadd.f32 %v2103_v31, %v1027_v51 }
 0x2f9   :  { %v1329_v58 = vrot.slane %v1328_v55, 4  ;;  %1150 = vmatmul.bf16.vlgmr.msra.gmra.mxu0 %v1074_v56  ;;  %v1047_v63 = vadd.f32 %v1046_v50, %v1028_v60 }
 0x2fb   :  { %v1330_v62 = vadd.f32 %v1329_v58, %v1328_v55  ;;  %v1066_v53 = vadd.f32 %v1065_v57, %v1047_v63 }
 0x2fd   :  { %v1331_v4 = vrot.slane %v1330_v62, 2  ;;  %v2421_v8 = vmax.f32 %v1066_v53, 0.0 }
 0x2fe   :  { %v1029_v27 = vpop.f32.mrf.mxu2 }
 0x2ff   :  { %v1030_v28 = vadd.f32 %v2103_v31, %v1029_v27  ;;  %v1332_v54 = vadd.f32 %v1331_v4, %v1330_v62  ;;  %v2060_v31 = vld [vmem:[#allocation2 + $0x2a8] sm:$0xff]  ;;  %v2105_v62 = vld [vmem:[%s2522_s2 + $0x7] ss:$0 sm:$0xff] }
 0x300   :  { %1239 = vmatpush.bf16.msra.mxu2 %v2060_v31  ;;  %v2106_v4 = vld [vmem:[%s2522_s2 + $0x8] ss:$0 sm:$0xff] }
 0x301   :  { %v1049_v5 = vadd.f32 %v1048_v3, %v1030_v28  ;;  %v1333_v49 = vrot.slane %v1332_v54, 1 }
 0x303   :  { %v1068_v7 = vadd.f32 %v1067_v6, %v1049_v5  ;;  %v1334_v16 = vadd.f32 %v1333_v49, %v1332_v54 }
 0x304   :  { %1240 = vmatpush.bf16.msra.mxu2 %v2059_v32 }
 0x305   :  { %v2423_v9 = vmax.f32 %v1068_v7, 0.0  ;;  %v1342_v19 = vmul.f32 %v1334_v16, %v2289_v2 }
 0x307   :  { %v1335_v10 = vadd.f32 %v2423_v9, %v2421_v8  ;;  %v1075_v11 = vpack.c.bf16 %v2423_v9, %v2421_v8  ;;  %v1344_v59 = vpack.c.bf16 %v1342_v19, %v1342_v19  ;;  %v2107_v19 = vld [vmem:[%s2522_s2 + $0x9] ss:$0 sm:$0xff] }
 0x309   :  { %v1336_v13 = vrot.slane %v1335_v10, 4  ;;  %1155 = vmatmul.bf16.gmra.mxu0 %v1075_v11  ;;  %v1366_v23 = vunpack.c.l.b16 %v1344_v59 }
 0x30b   :  { %v1337_v14 = vadd.f32 %v1336_v13, %v1335_v10 }
 0x30d   :  { %v1338_v15 = vrot.slane %v1337_v14, 2 }
 0x30f   :  { %v1339_v43 = vadd.f32 %v1338_v15, %v1337_v14 }
 0x311   :  { %v1340_v17 = vrot.slane %v1339_v43, 1 }
 0x313   :  { %v1341_v20 = vadd.f32 %v1340_v17, %v1339_v43 }
 0x315   :  { %v1343_v21 = vmul.f32 %v1341_v20, %v2289_v2  ;;  %v2080_v2 = vld [vmem:[#allocation2 + $0x308] sm:$0xff] }
 0x316   :  { %1502 = vmatpush.bf16.msrb.mxu1 %v2080_v2 }
 0x317   :  { %v1345_v22 = vpack.c.bf16 %v1343_v21, %v1343_v21 }
 0x319   :  { %v1367_v24 = vunpack.c.l.b16 %v1345_v22 }
 0x31a   :  { %1503 = vmatpush.bf16.msrb.mxu1 %v2079_v35 }
 0x31b   :  { %v1368_v18 = vsel %vm610_vm8, %v1367_v24, %v1366_v23 }
 0x31c   :  { %v1369_v26 = vpack.c.b16 %v1368_v18, %v1368_v18 }
 0x31e   :  { %1427 = vmatmul.bf16.vlgmr.msra.gmra.mxu3 %v1369_v26  ;;  %1504 = vmatpush.bf16.msrb.mxu1 %v2078_v37 }
 0x322   :  { %1505 = vmatpush.bf16.msrb.mxu1 %v2077_v39 }
 0x326   :  { %1506 = vmatpush.bf16.msrb.mxu1 %v2076_v44 }
 0x32a   :  { %1507 = vmatpush.bf16.msrb.mxu1 %v2075_v52 }
 0x376   :  { %v1151_v36 = vpop.f32.mrf.mxu0 }
 0x377   :  { %v1152_v40 = vadd.f32 %v2104_v38, %v1151_v36 }
 0x379   :  { %v1161_v45 = vmax.f32 %v1152_v40, 0.0 }
 0x37e   :  { %v1153_v41 = vpop.f32.mrf.mxu0 }
 0x37f   :  { %v1154_v42 = vadd.f32 %v2104_v38, %v1153_v41 }
 0x381   :  { %v1162_v46 = vmax.f32 %v1154_v42, 0.0 }
 0x383   :  { %v1165_v50 = vpack.c.bf16 %v1162_v46, %v1161_v45 }
 0x385   :  { %1241 = vmatmul.bf16.vlgmr.msra.gmra.mxu2 %v1165_v50 }
 0x386   :  { %v1156_v51 = vpop.f32.mrf.mxu0 }
 0x387   :  { %v1157_v55 = vadd.f32 %v2104_v38, %v1156_v51 }
 0x389   :  { %v1163_v58 = vmax.f32 %v1157_v55, 0.0 }
 0x38e   :  { %v1158_v56 = vpop.f32.mrf.mxu0 }
 0x38f   :  { %v1159_v57 = vadd.f32 %v2104_v38, %v1158_v56 }
 0x391   :  { %v1164_v60 = vmax.f32 %v1159_v57, 0.0 }
 0x393   :  { %v1166_v61 = vpack.c.bf16 %v1164_v60, %v1163_v58 }
 0x395   :  { %1246 = vmatmul.bf16.gmra.mxu2 %v1166_v61 }
 0x3a1   :  { %v1428_v63 = vpop.f32.mrf.mxu3 }
 0x3a2   :  { %v1429_v27 = vadd.f32 %v2105_v62, %v1428_v63 }
 0x3a4   :  { %v1432_v1 = vmax.f32 %v1429_v27, 0.0 }
 0x3a6   :  { %v1433_v28 = vpack.c.bf16 %v1432_v1, %v1432_v1 }
 0x3a8   :  { %1508 = vmatmul.bf16.vlgmr.msrb.gmra.mxu1 %v1433_v28 }
 0x3a9   :  { %v1430_v3 = vpop.f32.mrf.mxu3 }
 0x408   :  { %v1242_v0 = vpop.f32.mrf.mxu2 }
 0x409   :  { %v1243_v53 = vadd.f32 %v2106_v4, %v1242_v0 }
 0x40b   :  { %v1914_v6 = vmul.f32 -1.442695, %v1243_v53 }
 0x40d   :  { %2130 = vpow2.f32 %v1914_v6 }
 0x410   :  { %v1244_v5 = vpop.f32.mrf.mxu2 }
 0x411   :  { %v1245_v7 = vadd.f32 %v2106_v4, %v1244_v5 }
 0x413   :  { %v1915_v25 = vmul.f32 -1.442695, %v1245_v7  ;;  %v2131_v11 = vpop.eup %2130 }
 0x414   :  { %v1264_v13 = vadd.f32 1.0, %v2131_v11 }
 0x415   :  { %2132 = vpow2.f32 %v1915_v25 }
 0x416   :  { %v1277_v40 = vand.u32 2147483647, %v1264_v13  ;;  %v1279_v42 = vand.u32 2147483648, %v1264_v13  ;;  %vm1273_vm3 = vweird.f32 %v1264_v13 }
 0x418   :  { %v1247_v54 = vpop.f32.mrf.mxu2  ;;  %vm2464_vm6 = vcmp.eq.f32.partialorder %v1277_v40, 8.507059e+37  ;;  %v1280_v57 = vor.u32 1.1754944e-38, %v1279_v42 }
 0x419   :  { %v1248_v10 = vadd.f32 %v2106_v4, %v1247_v54 }
 0x41b   :  { %v1916_v12 = vmul.f32 -1.442695, %v1248_v10  ;;  %v2133_v49 = vpop.eup %2132 }
 0x41c   :  { %v2441_v14 = vadd.f32 1.0, %v2133_v49 }
 0x41d   :  { %2134 = vpow2.f32 %v1916_v12 }
 0x41e   :  { %2136 = vrcp.f32 %v1264_v13  ;;  %vm1288_vm7 = vweird.f32 %v2441_v14  ;;  %v1292_v61 = vand.u32 2147483647, %v2441_v14  ;;  %v1294_v62 = vand.u32 2147483648, %v2441_v14 }
 0x41f   :  { %2138 = vrcp.f32 %v2441_v14 }
 0x420   :  { %v1249_v15 = vpop.f32.mrf.mxu2  ;;  %vm1293_vm5 = vcmp.eq.f32.partialorder %v1292_v61, 8.507059e+37  ;;  %v1295_v12 = vor.u32 1.1754944e-38, %v1294_v62 }
 0x421   :  { %v1250_v16 = vadd.f32 %v2106_v4, %v1249_v15 }
 0x423   :  { %v2135_v43 = vpop.eup %2134  ;;  %v1917_v17 = vmul.f32 -1.442695, %v1250_v16 }
 0x424   :  { %v2447_v20 = vadd.f32 1.0, %v2135_v43  ;;  %v2137_v22 = vpop.eup %2136 }
 0x425   :  { %2140 = vpow2.f32 %v1917_v17  ;;  %v1509_v21 = vpop.f32.mrf.mxu1  ;;  %v2450_v24 = vpop.eup %2138  ;;  %v1269_v26 = vmul.f32 %v2137_v22, %v1264_v13  ;;  %vm1274_vm0 = vweird.f32 %v2137_v22 }
 0x426   :  { %2142 = vrcp.f32 %v2447_v20  ;;  %v1510_v59 = vadd.f32 %v2107_v19, %v1509_v21  ;;  %v1284_v32 = vmul.f32 %v2450_v24, %v2441_v14  ;;  %vm2468_vm8 = vmor %vm1273_vm3, %vm1274_vm0  ;;  %vm1289_vm9 = vweird.f32 %v2450_v24 }
 0x427   :  { %v1270_v33 = vsub.f32 1.0, %v1269_v26  ;;  %vm1303_vm10 = vweird.f32 %v2447_v20  ;;  %v1307_v1 = vand.u32 2147483647, %v2447_v20  ;;  %vm2483_vm13 = vmor %vm1288_vm7, %vm1289_vm9  ;;  %v1309_v3 = vand.u32 2147483648, %v2447_v20 }
 0x428   :  { %v1982_v23 = vmul.f32 -1.442695, %v1510_v59  ;;  %v1285_v35 = vsub.f32 1.0, %v1284_v32 }
 0x429   :  { %v1271_v37 = vmul.f32 %v2137_v22, %v1270_v33  ;;  %v1310_v13 = vor.u32 1.1754944e-38, %v1309_v3  ;;  %vm1308_vm0 = vcmp.eq.f32.partialorder %v1307_v1, 8.507059e+37 }
 0x42a   :  { %2144 = vpow2.f32 %v1982_v23  ;;  %v1286_v44 = vmul.f32 %v2450_v24, %v1285_v35 }
 0x42b   :  { %v2141_v18 = vpop.eup %2140  ;;  %v1272_v45 = vadd.f32 %v2137_v22, %v1271_v37 }
 0x42c   :  { %v2452_v29 = vadd.f32 1.0, %v2141_v18  ;;  %v2454_v30 = vpop.eup %2142  ;;  %v1287_v58 = vadd.f32 %v2450_v24, %v1286_v44 }
 0x42d   :  { %v1511_v31 = vpop.f32.mrf.mxu1  ;;  %v1299_v34 = vmul.f32 %v2454_v30, %v2447_v20  ;;  %v1276_v60 = vsel %vm2468_vm8, %v2137_v22, %v1272_v45  ;;  %vm1304_vm12 = vweird.f32 %v2454_v30 }
 0x42e   :  { %2146 = vrcp.f32 %v2452_v29  ;;  %v1291_v53 = vsel %vm2483_vm13, %v2450_v24, %v1287_v58  ;;  %vm1318_vm1 = vweird.f32 %v2452_v29  ;;  %v1324_v5 = vand.u32 2147483648, %v2452_v29  ;;  %vm2493_vm15 = vmor %vm1303_vm10, %vm1304_vm12 }
 0x42f   :  { %v1300_v39 = vsub.f32 1.0, %v1299_v34  ;;  %v1322_v25 = vand.u32 2147483647, %v2452_v29  ;;  %v1281_v11 = vsel %vm2464_vm6, %v1280_v57, %v1276_v60  ;;  %v1296_v16 = vsel %vm1293_vm5, %v1295_v12, %v1291_v53 }
 0x430   :  { %v2145_v2 = vpop.eup %2144  ;;  %v1325_v43 = vor.u32 1.1754944e-38, %v1324_v5  ;;  %v1532_v22 = vmul.f32 %v1281_v11, %v2413_v47  ;;  %v1533_v23 = vmul.f32 %v1296_v16, %v2415_v48 }
 0x431   :  { %v1516_v36 = vadd.f32 1.0, %v2145_v2  ;;  %v1301_v50 = vmul.f32 %v2454_v30, %v1300_v39  ;;  %vm1323_vm8 = vcmp.eq.f32.partialorder %v1322_v25, 8.507059e+37 }
 0x433   :  { %2148 = vrcp.f32 %v1516_v36  ;;  %v1302_v27 = vadd.f32 %v2454_v30, %v1301_v50  ;;  %v1528_v6 = vand.u32 2147483648, %v1516_v36  ;;  %v1526_v10 = vand.u32 2147483647, %v1516_v36 }
 0x434   :  { %v2147_v38 = vpop.eup %2146  ;;  %vm1522_vm4 = vweird.f32 %v1516_v36 }
 0x435   :  { %v1314_v41 = vmul.f32 %v2147_v38, %v2452_v29  ;;  %vm1319_vm14 = vweird.f32 %v2147_v38  ;;  %v1306_v49 = vsel %vm2493_vm15, %v2454_v30, %v1302_v27  ;;  %v1529_v17 = vor.u32 1.1754944e-38, %v1528_v6 }
 0x436   :  { %vm1320_vm11 = vmor %vm1318_vm1, %vm1319_vm14  ;;  %v1311_v19 = vsel %vm1308_vm0, %v1310_v13, %v1306_v49  ;;  %vm1527_vm6 = vcmp.eq.f32.partialorder %v1526_v10, 8.507059e+37 }
 0x437   :  { %v1315_v46 = vsub.f32 1.0, %v1314_v41  ;;  %v1534_v26 = vmul.f32 %v1311_v19, %v2421_v8 }
 0x439   :  { %v1316_v52 = vmul.f32 %v2147_v38, %v1315_v46  ;;  %v2149_v55 = vpop.eup %2148 }
 0x43a   :  { %v1518_v63 = vmul.f32 %v2149_v55, %v1516_v36  ;;  %vm1523_vm2 = vweird.f32 %v2149_v55 }
 0x43b   :  { %v1317_v0 = vadd.f32 %v2147_v38, %v1316_v52  ;;  %vm1524_vm3 = vmor %vm1522_vm4, %vm1523_vm2 }
 0x43c   :  { %v1519_v4 = vsub.f32 1.0, %v1518_v63 }
 0x43d   :  { %v1321_v14 = vsel %vm1320_vm11, %v2147_v38, %v1317_v0 }
 0x43e   :  { %v1520_v54 = vmul.f32 %v2149_v55, %v1519_v4  ;;  %v1326_v21 = vsel %vm1323_vm8, %v1325_v43, %v1321_v14 }
 0x43f   :  { %v1535_v29 = vmul.f32 %v1326_v21, %v2423_v9 }
 0x440   :  { %v1521_v15 = vadd.f32 %v2149_v55, %v1520_v54 }
 0x442   :  { %v1525_v20 = vsel %vm1524_vm3, %v2149_v55, %v1521_v15 }
 0x443   :  { %v1530_v59 = vsel %vm1527_vm6, %v1529_v17, %v1525_v20 }
 0x444   :  { %v1537_v24 = vrot.slane %v1530_v59, 1  ;;  %v1538_v18 = vperm.slane %v1530_v59, 0 }
 0x446   :  { %v1539_v30 = vperm.slane %v1537_v24, 0  ;;  %v1542_v31 = vmul.f32 %v1538_v18, %v1532_v22  ;;  %v1543_v32 = vmul.f32 %v1538_v18, %v1533_v23 }
 0x448   :  { %v1544_v33 = vmul.f32 %v1539_v30, %v1534_v26  ;;  %v1545_v34 = vmul.f32 %v1539_v30, %v1535_v29  ;;  %1546 = vst [vmem:[%s2523_s3] sm:$0xff] %v1542_v31 }
 0x449   :  { %1547 = vst [vmem:[%s2523_s3 + $0x8] sm:$0xff] %v1543_v32 }
 0x44a   :  { %1548 = vst [vmem:[%s2523_s3 + $0x10] sm:$0xff] %v1544_v33 }
 0x44b   :  { %1549 = vst [vmem:[%s2523_s3 + $0x18] sm:$0xff] %v1545_v34 }
 0x44c   :  { %1554 = vsyncpa [#allocation3], 1 }

</bundles_post_ra>
